<compile_context>
chip_gen: v6e
topology: v6e:2x2x1
jax: 0.10.0
libtpu: 0.0.40
codegen_flags: <defaults>
</compile_context>

<pallas_src>
import jax
import jax.numpy as jnp
from jax import lax
from jax.experimental import pallas as pl
from jax.experimental.pallas import tpu as pltpu

POSE_DIM = 28  # 3 translation + 22 qpos + 3 euler


# --------------------------------------------------------------------------- pose math
def _pose_and_para(pred_pose_norm, norm_pose, norm_factor):
    """get_hand_model_pose + the para (MSE) loss, in plain jnp.

    This is only (B, 28) of work; a dedicated pallas_call for it was pure launch
    overhead (perf review), so it now runs as ordinary XLA ops in the wrapper."""
    pred = pred_pose_norm.astype(jnp.float32)
    tgt = norm_pose.astype(jnp.float32)
    fac = norm_factor.astype(jnp.float32)

    para_loss = jnp.mean(jnp.square(pred - tgt))             # F.mse_loss (mean)

    # TODO(synk): TaskDataset_Pose.denorm_by_<norm_type> is unavailable; using the
    # scale denorm x * factor (factor layout: [trans(3) | euler(3) | qpos(22)]).
    trans = pred[:, 0:3] * fac[0:3]
    qpos = pred[:, 3:25] * fac[6:28]
    euler = pred[:, 25:28] * fac[3:6]                         # (ez, ey, ex), 'ZYX'

    half = 0.5 * euler
    cz, sz = jnp.cos(half[:, 0]), jnp.sin(half[:, 0])
    cy, sy = jnp.cos(half[:, 1]), jnp.sin(half[:, 1])
    cx, sx = jnp.cos(half[:, 2]), jnp.sin(half[:, 2])

    # quaternion of Rz(ez) @ Ry(ey) @ Rx(ex)  (pytorch3d euler_angles_to_matrix, 'ZYX')
    qw = cz * cy * cx + sz * sy * sx
    qx = cz * cy * sx - sz * sy * cx
    qy = cz * sy * cx + sz * cy * sx
    qz = sz * cy * cx - cz * sy * sx

    # standardize sign (real part >= 0): picks the |angle| <= pi axis-angle
    # representative (rotation-equivalent to pytorch3d's matrix_to_quaternion path).
    sgn = jnp.where(qw < 0.0, -1.0, 1.0)
    qw, qx, qy, qz = qw * sgn, qx * sgn, qy * sgn, qz * sgn

    # quaternion -> axis-angle (pytorch3d quaternion_to_axis_angle)
    n = jnp.sqrt(qx * qx + qy * qy + qz * qz)
    half_angle = jnp.arctan2(n, qw)
    angle = 2.0 * half_angle
    small = jnp.abs(angle) < 1e-6
    safe_angle = jnp.where(small, 1.0, angle)
    s_over = jnp.where(small, 0.5 - angle * angle / 48.0,
                       jnp.sin(half_angle) / safe_angle)
    ax, ay, az = qx / s_over, qy / s_over, qz / s_over

    # hand_model_pose = cat([translation, flip(axis_angle), qpos], -1)
    axis_angle_flipped = jnp.stack([az, ay, ax], axis=-1)
    hand_model_pose = jnp.concatenate([trans, axis_angle_flipped, qpos], axis=-1)
    return hand_model_pose, para_loss


# --------------------------------------------------------------------------- kernel
def _sqnorm(x):
    """Row-wise squared norm of an (N, 3) cloud as an unrolled 3-term sum.

    Pure VPU multiply/adds on lane slices -- no cross-lane XLU reduce (perf review)."""
    return (x[:, 0:1] * x[:, 0:1]
            + x[:, 1:2] * x[:, 1:2]
            + x[:, 2:3] * x[:, 2:3])                          # (N, 1)


def _hand_loss_kernel(pred_ref, tgt_ref, obj_ref, pen_ref, kp_ref, out_ref):
    ps = pred_ref[0]    # (Np, 3)   predicted hand surface points
    ts = tgt_ref[0]     # (Nt, 3)   target hand surface points
    obj = obj_ref[0]    # (No, 3)   object points
    pen = pen_ref[0]    # (1, Npen) penetration distances
    kp = kp_ref[0]      # (K, 3)    penetration keypoints

    NP = ps.shape[0]

    # squared norms, computed once (unrolled, VPU-only) and reused below
    ps_sq = _sqnorm(ps)      # (Np, 1)
    ts_sq = _sqnorm(ts)      # (Nt, 1)
    obj_sq = _sqnorm(obj)    # (No, 1)
    kp_sq = _sqnorm(kp)      # (K, 1)

    # ---- hand_chamfer: squared-distance chamfer, point_reduction='sum' ----
    # MXU Gram identity d2 = ||a||^2 + ||b||^2 - 2 a.b  (clamped at 0 for f32
    # cancellation).  Default Mosaic matmul precision; the ~1e-3-relative Gram error
    # regime only matters for near-zero distances, which the clamp + the explicit
    # diagonal mask below already handle for the fragile cases.
    g_pt = lax.dot_general(ps, ts, (((1,), (1,)), ((), ())),
                           preferred_element_type=jnp.float32)           # (Np, Nt)
    d2_pt = jnp.maximum(ps_sq + jnp.transpose(ts_sq) - 2.0 * g_pt, 0.0)
    cham = (jnp.sum(jnp.min(d2_pt, axis=1, keepdims=True), axis=0, keepdims=True)
            + jnp.sum(jnp.min(d2_pt, axis=0, keepdims=True), axis=1, keepdims=True))

    # ---- cmap: one fused Gram for both contact maps, hand-major orientation ----
    hand_cat = jnp.concatenate([ps, ts], axis=0)                          # (Np+Nt, 3)
    hand_sq = jnp.concatenate([ps_sq, ts_sq], axis=0)                     # (Np+Nt, 1)
    g_ho = lax.dot_general(hand_cat, obj, (((1,), (1,)), ((), ())),
                           preferred_element_type=jnp.float32)            # (Np+Nt, No)
    d2_ho = jnp.maximum(hand_sq + jnp.transpose(obj_sq) - 2.0 * g_ho, 0.0)
    # per-object-point nearest-hand distance: sublane-axis min over static row blocks,
    # result (1, No) is lane-dense so sqrt / exp / sigmoid below fill 128 lanes.
    dmin_pred = jnp.sqrt(jnp.min(d2_ho[:NP, :], axis=0, keepdims=True))   # (1, No)
    dmin_gt = jnp.sqrt(jnp.min(d2_ho[NP:, :], axis=0, keepdims=True))     # (1, No)
    # TODO(synk): contact_map_of_m_to_n source unavailable; using the common
    # 1 - 2*(sigmoid(100*d) - 0.5) definition (exact sigmoid, matches reference form).
    cm_pred = 1.0 - 2.0 * (1.0 / (1.0 + jnp.exp(-100.0 * dmin_pred)) - 0.5)
    cm_gt = 1.0 - 2.0 * (1.0 / (1.0 + jnp.exp(-100.0 * dmin_gt)) - 0.5)
    cdiff = cm_pred - cm_gt
    cmapv = jnp.sum(cdiff * cdiff, axis=1, keepdims=True)                 # (1, 1)

    # ---- obj_penetration: sum of positive penetration depths ----
    objpen = jnp.sum(jnp.where(pen > 0.0, pen, 0.0), axis=1, keepdims=True)

    # ---- self_penetration ----
    K = kp.shape[0]
    g_kk = lax.dot_general(kp, kp, (((1,), (1,)), ((), ())),
                           preferred_element_type=jnp.float32)            # (K, K)
    d2_kk = jnp.maximum(kp_sq + jnp.transpose(kp_sq) - 2.0 * g_kk, 0.0)
    dk = jnp.sqrt(d2_kk)
    # explicit diagonal exclusion (correctness: the Gram-identity diagonal is not
    # exactly zero on the MXU), plus the reference's coincident-point guard.
    row = lax.broadcasted_iota(jnp.int32, (K, K), 0)
    col = lax.broadcasted_iota(jnp.int32, (K, K), 1)
    dk = jnp.where(row == col, 1e6, dk)
    dk = jnp.where(dk < 1e-6, 1e6, dk)
    dk = jnp.maximum(0.02 - dk, 0.0)
    selfpen = jnp.sum(jnp.sum(dk, axis=1, keepdims=True), axis=0, keepdims=True)

    # single store of the 4 per-batch partials (no carried accumulator / pl.when)
    out_ref[...] = jnp.concatenate([cham, cmapv, objpen, selfpen],
                                   axis=1).reshape(1, 1, 4)


def _hand_losses_pallas(pred_surf, tgt_surf, obj_pc, penetration, keypoints):
    B, NP, _ = pred_surf.shape
    NT = tgt_surf.shape[1]
    NO = obj_pc.shape[1]
    NPEN = penetration.shape[-1]
    NK = keypoints.shape[1]
    pen3 = penetration.reshape(B, 1, NPEN).astype(jnp.float32)

    out = pl.pallas_call(
        _hand_loss_kernel,
        grid=(B,),
        in_specs=[
            pl.BlockSpec((1, NP, 3), lambda b: (b, 0, 0)),
            pl.BlockSpec((1, NT, 3), lambda b: (b, 0, 0)),
            pl.BlockSpec((1, NO, 3), lambda b: (b, 0, 0)),
            pl.BlockSpec((1, 1, NPEN), lambda b: (b, 0, 0)),
            pl.BlockSpec((1, NK, 3), lambda b: (b, 0, 0)),
        ],
        out_specs=pl.BlockSpec((1, 1, 4), lambda b: (b, 0, 0)),
        out_shape=jax.ShapeDtypeStruct((B, 1, 4), jnp.float32),
        # independent per-batch steps -> batch axis can shard across 2 TCs on v7x
        compiler_params=pltpu.CompilerParams(
            dimension_semantics=("parallel",),
            vmem_limit_bytes=32 * 1024 * 1024,   # v5e scoped default is only 16 MiB
        ),
    )(pred_surf.astype(jnp.float32), tgt_surf.astype(jnp.float32),
      obj_pc.astype(jnp.float32), pen3, keypoints.astype(jnp.float32))

    totals = jnp.sum(out[:, 0, :], axis=0)   # (4,) batch reduction in the wrapper
    return totals[0], totals[1], totals[2], totals[3]


# --------------------------------------------------------------------------- wrapper
def grasp_loss_pose_forward_train(outputs, targets, norm_factor):
    """forward_train path of GraspLossPose (self.training == True, so no Matcher)."""
    pred_pose_norm = outputs['pred_pose_norm']
    norm_pose = targets['norm_pose']
    B = pred_pose_norm.shape[0]

    # get_hand_model_pose (denorm + euler->axis-angle, flipped) + para MSE loss
    hand_model_pose, para_loss = _pose_and_para(pred_pose_norm, norm_pose, norm_factor)

    # TODO(synk): HandModel (articulated forward kinematics + object SDF) has no clean
    # Pallas equivalent; its outputs (surface_points / penetration /
    # penetration_keypoints) are supplied directly as synthetic tensors.
    pred_hand = outputs['hand']
    tgt_hand = targets['hand']
    obj_pc = targets['obj_pc']

    cham, cmap_sq, objpen, selfpen = _hand_losses_pallas(
        pred_hand['surface_points'], tgt_hand['surface_points'], obj_pc,
        pred_hand['penetration'], pred_hand['penetration_keypoints'])

    NO = obj_pc.shape[1]
    losses = {
        'para': para_loss,                                    # F.mse_loss (mean)
        'hand_chamfer': cham / B,                             # chamfer sum / batch mean
        'cmap': cmap_sq / (B * NO),                           # MSE over contact maps
        'obj_penetration': objpen / B,
        'self_penetration': selfpen / B,
    }
    return losses, hand_model_pose


# --------------------------------------------------------------------------- main
if __name__ == "__main__":
    key = jax.random.PRNGKey(0)
    ks = jax.random.split(key, 8)

    B, NPTS, NOBJ, NPEN, NKP = 2, 128, 128, 128, 16

    outputs = {
        'pred_pose_norm': 0.5 * jax.random.normal(ks[0], (B, POSE_DIM), jnp.float32),
        'hand': {
            'surface_points': 0.1 * jax.random.normal(ks[2], (B, NPTS, 3), jnp.float32),
            'penetration': 0.01 * jax.random.normal(ks[4], (B, NPEN), jnp.float32),
            'penetration_keypoints': 0.05 * jax.random.normal(ks[5], (B, NKP, 3),
                                                              jnp.float32),
        },
    }
    targets = {
        'norm_pose': 0.5 * jax.random.normal(ks[1], (B, POSE_DIM), jnp.float32),
        'obj_pc': 0.1 * jax.random.normal(ks[6], (B, NOBJ, 3), jnp.float32),
        'hand': {
            'surface_points': 0.1 * jax.random.normal(ks[3], (B, NPTS, 3), jnp.float32),
        },
    }

    # deterministic stand-in for TaskDataset_Pose.factor_<norm_type> (3 trans | 3 rot | 22 qpos)
    norm_factor = jnp.linspace(0.1, 1.0, POSE_DIM, dtype=jnp.float32)

    losses, hand_model_pose = grasp_loss_pose_forward_train(outputs, targets, norm_factor)
    jax.block_until_ready((losses, hand_model_pose))
    print("KERNEL_OK")
</pallas_src>

<mosaic_0001>
module attributes {stable_mosaic.version = 11 : i64} {
  func.func @_hand_loss_kernel(%arg0: i32, %arg1: memref<1x128x3xf32, #tpu.memory_space<vmem>>, %arg2: memref<1x128x3xf32, #tpu.memory_space<vmem>>, %arg3: memref<1x128x3xf32, #tpu.memory_space<vmem>>, %arg4: memref<1x1x128xf32, #tpu.memory_space<vmem>>, %arg5: memref<1x16x3xf32, #tpu.memory_space<vmem>>, %arg6: memref<1x1x4xf32, #tpu.memory_space<vmem>>) attributes {dimension_semantics = [#tpu.dimension_semantics<parallel>], iteration_bounds = array<i64: 2>, scalar_prefetch = 0 : i64, scratch_operands = 0 : i64, tpu.core_type = #tpu.core_type<tc>, window_params = [{transform_indices = @transform_0, window_bounds = array<i64: 1, 128, 3>}, {transform_indices = @transform_1, window_bounds = array<i64: 1, 128, 3>}, {transform_indices = @transform_2, window_bounds = array<i64: 1, 128, 3>}, {transform_indices = @transform_3, window_bounds = array<i64: 1, 1, 128>}, {transform_indices = @transform_4, window_bounds = array<i64: 1, 16, 3>}, {transform_indices = @transform_5, window_bounds = array<i64: 1, 1, 4>}]} {
    %c0 = arith.constant 0 : index
    %c0_0 = arith.constant 0 : index
    %c0_1 = arith.constant 0 : index
    %0 = vector.load %arg1[%c0, %c0_0, %c0_1] : memref<1x128x3xf32, #tpu.memory_space<vmem>>, vector<1x128x3xf32>
    %1 = vector.shape_cast %0 : vector<1x128x3xf32> to vector<128x3xf32>
    %c0_2 = arith.constant 0 : index
    %c0_3 = arith.constant 0 : index
    %c0_4 = arith.constant 0 : index
    %2 = vector.load %arg2[%c0_2, %c0_3, %c0_4] : memref<1x128x3xf32, #tpu.memory_space<vmem>>, vector<1x128x3xf32>
    %3 = vector.shape_cast %2 : vector<1x128x3xf32> to vector<128x3xf32>
    %c0_5 = arith.constant 0 : index
    %c0_6 = arith.constant 0 : index
    %c0_7 = arith.constant 0 : index
    %4 = vector.load %arg3[%c0_5, %c0_6, %c0_7] : memref<1x128x3xf32, #tpu.memory_space<vmem>>, vector<1x128x3xf32>
    %5 = vector.shape_cast %4 : vector<1x128x3xf32> to vector<128x3xf32>
    %c0_8 = arith.constant 0 : index
    %c0_9 = arith.constant 0 : index
    %c0_10 = arith.constant 0 : index
    %6 = vector.load %arg4[%c0_8, %c0_9, %c0_10] : memref<1x1x128xf32, #tpu.memory_space<vmem>>, vector<1x1x128xf32>
    %7 = vector.shape_cast %6 : vector<1x1x128xf32> to vector<1x128xf32>
    %c0_11 = arith.constant 0 : index
    %c0_12 = arith.constant 0 : index
    %c0_13 = arith.constant 0 : index
    %8 = vector.load %arg5[%c0_11, %c0_12, %c0_13] : memref<1x16x3xf32, #tpu.memory_space<vmem>>, vector<1x16x3xf32>
    %9 = vector.shape_cast %8 : vector<1x16x3xf32> to vector<16x3xf32>
    %10 = vector.extract_strided_slice %1 {offsets = [0, 0], sizes = [128, 1], strides = [1, 1]} : vector<128x3xf32> to vector<128x1xf32>
    %11 = vector.extract_strided_slice %1 {offsets = [0, 0], sizes = [128, 1], strides = [1, 1]} : vector<128x3xf32> to vector<128x1xf32>
    %12 = arith.mulf %10, %11 : vector<128x1xf32>
    %13 = vector.extract_strided_slice %1 {offsets = [0, 1], sizes = [128, 1], strides = [1, 1]} : vector<128x3xf32> to vector<128x1xf32>
    %14 = vector.extract_strided_slice %1 {offsets = [0, 1], sizes = [128, 1], strides = [1, 1]} : vector<128x3xf32> to vector<128x1xf32>
    %15 = arith.mulf %13, %14 : vector<128x1xf32>
    %16 = arith.addf %12, %15 : vector<128x1xf32>
    %17 = vector.extract_strided_slice %1 {offsets = [0, 2], sizes = [128, 1], strides = [1, 1]} : vector<128x3xf32> to vector<128x1xf32>
    %18 = vector.extract_strided_slice %1 {offsets = [0, 2], sizes = [128, 1], strides = [1, 1]} : vector<128x3xf32> to vector<128x1xf32>
    %19 = arith.mulf %17, %18 : vector<128x1xf32>
    %20 = arith.addf %16, %19 : vector<128x1xf32>
    %21 = vector.extract_strided_slice %3 {offsets = [0, 0], sizes = [128, 1], strides = [1, 1]} : vector<128x3xf32> to vector<128x1xf32>
    %22 = vector.extract_strided_slice %3 {offsets = [0, 0], sizes = [128, 1], strides = [1, 1]} : vector<128x3xf32> to vector<128x1xf32>
    %23 = arith.mulf %21, %22 : vector<128x1xf32>
    %24 = vector.extract_strided_slice %3 {offsets = [0, 1], sizes = [128, 1], strides = [1, 1]} : vector<128x3xf32> to vector<128x1xf32>
    %25 = vector.extract_strided_slice %3 {offsets = [0, 1], sizes = [128, 1], strides = [1, 1]} : vector<128x3xf32> to vector<128x1xf32>
    %26 = arith.mulf %24, %25 : vector<128x1xf32>
    %27 = arith.addf %23, %26 : vector<128x1xf32>
    %28 = vector.extract_strided_slice %3 {offsets = [0, 2], sizes = [128, 1], strides = [1, 1]} : vector<128x3xf32> to vector<128x1xf32>
    %29 = vector.extract_strided_slice %3 {offsets = [0, 2], sizes = [128, 1], strides = [1, 1]} : vector<128x3xf32> to vector<128x1xf32>
    %30 = arith.mulf %28, %29 : vector<128x1xf32>
    %31 = arith.addf %27, %30 : vector<128x1xf32>
    %32 = vector.extract_strided_slice %5 {offsets = [0, 0], sizes = [128, 1], strides = [1, 1]} : vector<128x3xf32> to vector<128x1xf32>
    %33 = vector.extract_strided_slice %5 {offsets = [0, 0], sizes = [128, 1], strides = [1, 1]} : vector<128x3xf32> to vector<128x1xf32>
    %34 = arith.mulf %32, %33 : vector<128x1xf32>
    %35 = vector.extract_strided_slice %5 {offsets = [0, 1], sizes = [128, 1], strides = [1, 1]} : vector<128x3xf32> to vector<128x1xf32>
    %36 = vector.extract_strided_slice %5 {offsets = [0, 1], sizes = [128, 1], strides = [1, 1]} : vector<128x3xf32> to vector<128x1xf32>
    %37 = arith.mulf %35, %36 : vector<128x1xf32>
    %38 = arith.addf %34, %37 : vector<128x1xf32>
    %39 = vector.extract_strided_slice %5 {offsets = [0, 2], sizes = [128, 1], strides = [1, 1]} : vector<128x3xf32> to vector<128x1xf32>
    %40 = vector.extract_strided_slice %5 {offsets = [0, 2], sizes = [128, 1], strides = [1, 1]} : vector<128x3xf32> to vector<128x1xf32>
    %41 = arith.mulf %39, %40 : vector<128x1xf32>
    %42 = arith.addf %38, %41 : vector<128x1xf32>
    %43 = vector.extract_strided_slice %9 {offsets = [0, 0], sizes = [16, 1], strides = [1, 1]} : vector<16x3xf32> to vector<16x1xf32>
    %44 = vector.extract_strided_slice %9 {offsets = [0, 0], sizes = [16, 1], strides = [1, 1]} : vector<16x3xf32> to vector<16x1xf32>
    %45 = arith.mulf %43, %44 : vector<16x1xf32>
    %46 = vector.extract_strided_slice %9 {offsets = [0, 1], sizes = [16, 1], strides = [1, 1]} : vector<16x3xf32> to vector<16x1xf32>
    %47 = vector.extract_strided_slice %9 {offsets = [0, 1], sizes = [16, 1], strides = [1, 1]} : vector<16x3xf32> to vector<16x1xf32>
    %48 = arith.mulf %46, %47 : vector<16x1xf32>
    %49 = arith.addf %45, %48 : vector<16x1xf32>
    %50 = vector.extract_strided_slice %9 {offsets = [0, 2], sizes = [16, 1], strides = [1, 1]} : vector<16x3xf32> to vector<16x1xf32>
    %51 = vector.extract_strided_slice %9 {offsets = [0, 2], sizes = [16, 1], strides = [1, 1]} : vector<16x3xf32> to vector<16x1xf32>
    %52 = arith.mulf %50, %51 : vector<16x1xf32>
    %53 = arith.addf %49, %52 : vector<16x1xf32>
    %cst = arith.constant dense<0.000000e+00> : vector<128x128xf32>
    %54 = tpu.matmul %1, %3, %cst {dimension_numbers = #tpu.dot_dimension_numbers<[1], [1], [0], [0], [0, 0, 1, 0], [], []>} : vector<128x3xf32>, vector<128x3xf32>, vector<128x128xf32> -> vector<128x128xf32>
    %55 = tpu.transpose %31, [1, 0] : vector<128x1xf32> -> vector<1x128xf32>
    %56 = vector.broadcast %20 : vector<128x1xf32> to vector<128x128xf32>
    %57 = vector.broadcast %55 : vector<1x128xf32> to vector<128x128xf32>
    %58 = arith.addf %56, %57 : vector<128x128xf32>
    %cst_14 = arith.constant 2.000000e+00 : f32
    %59 = vector.broadcast %cst_14 : f32 to vector<128x128xf32>
    %60 = arith.mulf %59, %54 : vector<128x128xf32>
    %61 = arith.subf %58, %60 : vector<128x128xf32>
    %cst_15 = arith.constant 0.000000e+00 : f32
    %62 = vector.broadcast %cst_15 : f32 to vector<128x128xf32>
    %63 = arith.maximumf %61, %62 : vector<128x128xf32>
    %cst_16 = arith.constant dense<0x7F800000> : vector<128xf32>
    %64 = vector.multi_reduction <minimumf>, %63, %cst_16 [1] : vector<128x128xf32> to vector<128xf32>
    %65 = vector.shape_cast %64 : vector<128xf32> to vector<128x1xf32>
    %cst_17 = arith.constant dense<0.000000e+00> : vector<1xf32>
    %66 = vector.multi_reduction <add>, %65, %cst_17 [0] : vector<128x1xf32> to vector<1xf32>
    %67 = vector.shape_cast %66 : vector<1xf32> to vector<1x1xf32>
    %cst_18 = arith.constant dense<0x7F800000> : vector<128xf32>
    %68 = vector.multi_reduction <minimumf>, %63, %cst_18 [0] : vector<128x128xf32> to vector<128xf32>
    %69 = vector.shape_cast %68 : vector<128xf32> to vector<1x128xf32>
    %cst_19 = arith.constant dense<0.000000e+00> : vector<1xf32>
    %70 = vector.multi_reduction <add>, %69, %cst_19 [1] : vector<1x128xf32> to vector<1xf32>
    %71 = vector.shape_cast %70 : vector<1xf32> to vector<1x1xf32>
    %72 = arith.addf %67, %71 : vector<1x1xf32>
    %73 = tpu.concatenate %1, %3 in 0 : vector<128x3xf32>, vector<128x3xf32> -> vector<256x3xf32>
    %74 = tpu.concatenate %20, %31 in 0 : vector<128x1xf32>, vector<128x1xf32> -> vector<256x1xf32>
    %cst_20 = arith.constant dense<0.000000e+00> : vector<256x128xf32>
    %75 = tpu.matmul %73, %5, %cst_20 {dimension_numbers = #tpu.dot_dimension_numbers<[1], [1], [0], [0], [0, 0, 1, 0], [], []>} : vector<256x3xf32>, vector<128x3xf32>, vector<256x128xf32> -> vector<256x128xf32>
    %76 = tpu.transpose %42, [1, 0] : vector<128x1xf32> -> vector<1x128xf32>
    %77 = vector.broadcast %74 : vector<256x1xf32> to vector<256x128xf32>
    %78 = vector.broadcast %76 : vector<1x128xf32> to vector<256x128xf32>
    %79 = arith.addf %77, %78 : vector<256x128xf32>
    %cst_21 = arith.constant 2.000000e+00 : f32
    %80 = vector.broadcast %cst_21 : f32 to vector<256x128xf32>
    %81 = arith.mulf %80, %75 : vector<256x128xf32>
    %82 = arith.subf %79, %81 : vector<256x128xf32>
    %cst_22 = arith.constant 0.000000e+00 : f32
    %83 = vector.broadcast %cst_22 : f32 to vector<256x128xf32>
    %84 = arith.maximumf %82, %83 : vector<256x128xf32>
    %85 = vector.extract_strided_slice %84 {offsets = [0, 0], sizes = [128, 128], strides = [1, 1]} : vector<256x128xf32> to vector<128x128xf32>
    %cst_23 = arith.constant dense<0x7F800000> : vector<128xf32>
    %86 = vector.multi_reduction <minimumf>, %85, %cst_23 [0] : vector<128x128xf32> to vector<128xf32>
    %87 = vector.shape_cast %86 : vector<128xf32> to vector<1x128xf32>
    %88 = math.sqrt %87 : vector<1x128xf32>
    %89 = vector.extract_strided_slice %84 {offsets = [128, 0], sizes = [128, 128], strides = [1, 1]} : vector<256x128xf32> to vector<128x128xf32>
    %cst_24 = arith.constant dense<0x7F800000> : vector<128xf32>
    %90 = vector.multi_reduction <minimumf>, %89, %cst_24 [0] : vector<128x128xf32> to vector<128xf32>
    %91 = vector.shape_cast %90 : vector<128xf32> to vector<1x128xf32>
    %92 = math.sqrt %91 : vector<1x128xf32>
    %cst_25 = arith.constant -1.000000e+02 : f32
    %93 = vector.broadcast %cst_25 : f32 to vector<1x128xf32>
    %94 = arith.mulf %93, %88 : vector<1x128xf32>
    %95 = math.exp %94 : vector<1x128xf32>
    %cst_26 = arith.constant 1.000000e+00 : f32
    %96 = vector.broadcast %cst_26 : f32 to vector<1x128xf32>
    %97 = arith.addf %96, %95 : vector<1x128xf32>
    %cst_27 = arith.constant 1.000000e+00 : f32
    %98 = vector.broadcast %cst_27 : f32 to vector<1x128xf32>
    %99 = arith.divf %98, %97 : vector<1x128xf32>
    %cst_28 = arith.constant 5.000000e-01 : f32
    %100 = vector.broadcast %cst_28 : f32 to vector<1x128xf32>
    %101 = arith.subf %99, %100 : vector<1x128xf32>
    %cst_29 = arith.constant 2.000000e+00 : f32
    %102 = vector.broadcast %cst_29 : f32 to vector<1x128xf32>
    %103 = arith.mulf %102, %101 : vector<1x128xf32>
    %cst_30 = arith.constant 1.000000e+00 : f32
    %104 = vector.broadcast %cst_30 : f32 to vector<1x128xf32>
    %105 = arith.subf %104, %103 : vector<1x128xf32>
    %cst_31 = arith.constant -1.000000e+02 : f32
    %106 = vector.broadcast %cst_31 : f32 to vector<1x128xf32>
    %107 = arith.mulf %106, %92 : vector<1x128xf32>
    %108 = math.exp %107 : vector<1x128xf32>
    %cst_32 = arith.constant 1.000000e+00 : f32
    %109 = vector.broadcast %cst_32 : f32 to vector<1x128xf32>
    %110 = arith.addf %109, %108 : vector<1x128xf32>
    %cst_33 = arith.constant 1.000000e+00 : f32
    %111 = vector.broadcast %cst_33 : f32 to vector<1x128xf32>
    %112 = arith.divf %111, %110 : vector<1x128xf32>
    %cst_34 = arith.constant 5.000000e-01 : f32
    %113 = vector.broadcast %cst_34 : f32 to vector<1x128xf32>
    %114 = arith.subf %112, %113 : vector<1x128xf32>
    %cst_35 = arith.constant 2.000000e+00 : f32
    %115 = vector.broadcast %cst_35 : f32 to vector<1x128xf32>
    %116 = arith.mulf %115, %114 : vector<1x128xf32>
    %cst_36 = arith.constant 1.000000e+00 : f32
    %117 = vector.broadcast %cst_36 : f32 to vector<1x128xf32>
    %118 = arith.subf %117, %116 : vector<1x128xf32>
    %119 = arith.subf %105, %118 : vector<1x128xf32>
    %120 = arith.mulf %119, %119 : vector<1x128xf32>
    %cst_37 = arith.constant dense<0.000000e+00> : vector<1xf32>
    %121 = vector.multi_reduction <add>, %120, %cst_37 [1] : vector<1x128xf32> to vector<1xf32>
    %122 = vector.shape_cast %121 : vector<1xf32> to vector<1x1xf32>
    %cst_38 = arith.constant 0.000000e+00 : f32
    %123 = vector.broadcast %cst_38 : f32 to vector<1x128xf32>
    %124 = arith.cmpf ogt, %7, %123 : vector<1x128xf32>
    %cst_39 = arith.constant 0.000000e+00 : f32
    %125 = vector.broadcast %cst_39 : f32 to vector<1x128xf32>
    %126 = arith.select %124, %7, %125 : vector<1x128xi1>, vector<1x128xf32>
    %cst_40 = arith.constant dense<0.000000e+00> : vector<1xf32>
    %127 = vector.multi_reduction <add>, %126, %cst_40 [1] : vector<1x128xf32> to vector<1xf32>
    %128 = vector.shape_cast %127 : vector<1xf32> to vector<1x1xf32>
    %cst_41 = arith.constant dense<0.000000e+00> : vector<16x16xf32>
    %129 = tpu.matmul %9, %9, %cst_41 {dimension_numbers = #tpu.dot_dimension_numbers<[1], [1], [0], [0], [0, 0, 1, 0], [], []>} : vector<16x3xf32>, vector<16x3xf32>, vector<16x16xf32> -> vector<16x16xf32>
    %130 = tpu.transpose %53, [1, 0] : vector<16x1xf32> -> vector<1x16xf32>
    %131 = vector.broadcast %53 : vector<16x1xf32> to vector<16x16xf32>
    %132 = vector.broadcast %130 : vector<1x16xf32> to vector<16x16xf32>
    %133 = arith.addf %131, %132 : vector<16x16xf32>
    %cst_42 = arith.constant 2.000000e+00 : f32
    %134 = vector.broadcast %cst_42 : f32 to vector<16x16xf32>
    %135 = arith.mulf %134, %129 : vector<16x16xf32>
    %136 = arith.subf %133, %135 : vector<16x16xf32>
    %cst_43 = arith.constant 0.000000e+00 : f32
    %137 = vector.broadcast %cst_43 : f32 to vector<16x16xf32>
    %138 = arith.maximumf %136, %137 : vector<16x16xf32>
    %139 = math.sqrt %138 : vector<16x16xf32>
    %140 = tpu.iota {dimensions = array<i32: 0>} : vector<16x16xi32>
    %141 = tpu.iota {dimensions = array<i32: 1>} : vector<16x16xi32>
    %142 = arith.cmpi eq, %140, %141 : vector<16x16xi32>
    %cst_44 = arith.constant 1.000000e+06 : f32
    %143 = vector.broadcast %cst_44 : f32 to vector<16x16xf32>
    %144 = arith.select %142, %143, %139 : vector<16x16xi1>, vector<16x16xf32>
    %cst_45 = arith.constant 9.99999997E-7 : f32
    %145 = vector.broadcast %cst_45 : f32 to vector<16x16xf32>
    %146 = arith.cmpf olt, %144, %145 : vector<16x16xf32>
    %cst_46 = arith.constant 1.000000e+06 : f32
    %147 = vector.broadcast %cst_46 : f32 to vector<16x16xf32>
    %148 = arith.select %146, %147, %144 : vector<16x16xi1>, vector<16x16xf32>
    %cst_47 = arith.constant 2.000000e-02 : f32
    %149 = vector.broadcast %cst_47 : f32 to vector<16x16xf32>
    %150 = arith.subf %149, %148 : vector<16x16xf32>
    %cst_48 = arith.constant 0.000000e+00 : f32
    %151 = vector.broadcast %cst_48 : f32 to vector<16x16xf32>
    %152 = arith.maximumf %150, %151 : vector<16x16xf32>
    %cst_49 = arith.constant dense<0.000000e+00> : vector<16xf32>
    %153 = vector.multi_reduction <add>, %152, %cst_49 [1] : vector<16x16xf32> to vector<16xf32>
    %154 = vector.shape_cast %153 : vector<16xf32> to vector<16x1xf32>
    %cst_50 = arith.constant dense<0.000000e+00> : vector<1xf32>
    %155 = vector.multi_reduction <add>, %154, %cst_50 [0] : vector<16x1xf32> to vector<1xf32>
    %156 = vector.shape_cast %155 : vector<1xf32> to vector<1x1xf32>
    %157 = tpu.concatenate %72, %122, %128, %156 in 1 : vector<1x1xf32>, vector<1x1xf32>, vector<1x1xf32>, vector<1x1xf32> -> vector<1x4xf32>
    %158 = vector.shape_cast %157 : vector<1x4xf32> to vector<1x1x4xf32>
    %c0_51 = arith.constant 0 : index
    %c0_52 = arith.constant 0 : index
    %c0_53 = arith.constant 0 : index
    %159 = vector.load %arg6[%c0_51, %c0_52, %c0_53] : memref<1x1x4xf32, #tpu.memory_space<vmem>>, vector<1x1x4xf32>
    tpu.vector_store %arg6[%c0_51, %c0_52, %c0_53], %158 {strides = array<i32>} : memref<1x1x4xf32, #tpu.memory_space<vmem>>, vector<1x1x4xf32>,
    return
  }
  func.func @transform_0(%arg0: i32) -> (i32, i32, i32) {
    %c0_i32 = arith.constant 0 : i32
    %c0_i32_0 = arith.constant 0 : i32
    %c0_i32_1 = arith.constant 0 : i32
    return %arg0, %c0_i32, %c0_i32_0 : i32, i32, i32
  }
  func.func @transform_1(%arg0: i32) -> (i32, i32, i32) {
    %c0_i32 = arith.constant 0 : i32
    %c0_i32_0 = arith.constant 0 : i32
    %c0_i32_1 = arith.constant 0 : i32
    return %arg0, %c0_i32, %c0_i32_0 : i32, i32, i32
  }
  func.func @transform_2(%arg0: i32) -> (i32, i32, i32) {
    %c0_i32 = arith.constant 0 : i32
    %c0_i32_0 = arith.constant 0 : i32
    %c0_i32_1 = arith.constant 0 : i32
    return %arg0, %c0_i32, %c0_i32_0 : i32, i32, i32
  }
  func.func @transform_3(%arg0: i32) -> (i32, i32, i32) {
    %c0_i32 = arith.constant 0 : i32
    %c0_i32_0 = arith.constant 0 : i32
    %c0_i32_1 = arith.constant 0 : i32
    return %arg0, %c0_i32, %c0_i32_0 : i32, i32, i32
  }
  func.func @transform_4(%arg0: i32) -> (i32, i32, i32) {
    %c0_i32 = arith.constant 0 : i32
    %c0_i32_0 = arith.constant 0 : i32
    %c0_i32_1 = arith.constant 0 : i32
    return %arg0, %c0_i32, %c0_i32_0 : i32, i32, i32
  }
  func.func @transform_5(%arg0: i32) -> (i32, i32, i32) {
    %c0_i32 = arith.constant 0 : i32
    %c0_i32_0 = arith.constant 0 : i32
    %c0_i32_1 = arith.constant 0 : i32
    return %arg0, %c0_i32, %c0_i32_0 : i32, i32, i32
  }
}

</mosaic_0001>

<bundles_post_ra>
// kernel: tpu_custom_call.1
= control target key start
LH: loop header
LB: loop body
LE: loop exit
PB: predicated region body
PF: predicated region fallthrough
CT: control target
= control target key end

     0   :  { %10 = vsyncpa [#allocation3], 0  ;;  %s4348_s0 = inlined_call_operand.vmem [shape: f32[2,128,3], index: 0, kind: input, shape index: {}]   ;;  %s4349_s1 = inlined_call_operand.vmem [shape: f32[2,128,3], index: 1, kind: input, shape index: {}]   ;;  %s4350_s2 = inlined_call_operand.vmem [shape: f32[2,128,3], index: 2, kind: input, shape index: {}]   ;;  %s4351_s3 = inlined_call_operand.vmem [shape: f32[2,1,128], index: 3, kind: input, shape index: {}]   ;;  %s4352_s4 = inlined_call_operand.vmem [shape: f32[2,16,3], index: 4, kind: input, shape index: {}]   ;;  %s4353_s5 = inlined_call_operand.hbm [shape: f32[2,1,4], index: 5, kind: output, shape index: {}]  }
   0x1   :  { %12 = vsyncpa [#allocation3 + $0x1], 0  ;;  %s2736_s18 = smov 0   ;;  %s2738_s19 = smov 0  }
   0x2   :  { %s2740_s20 = smov 0   ;;  %s2742_s21 = smov 0  }
   0x3 LB: > { %s2757_s22 = sadd.s32 4294967295, %s2700_s21   ;;  %s2247_s23 = sadd.s32 4294967294, %s2700_s21   ;;  %s2700_s21 = sphi %s2742_s21, %s4642_s21   ;;  %s2696_s20 = sphi %s2740_s20, %s4641_s20   ;;  %s2692_s19 = sphi %s2738_s19, %s4640_s19   ;;  %s2688_s18 = sphi %s2736_s18, %s4639_s18  }
   0x4   : > { %s2761_s24 = sadd.s32 1, %s2700_s21   ;;  %s155_s25 = sadd.s32 1, %s2696_s20 }
   0x5   : > { %s152_s26 = ssub.s32 %s2700_s21, %s2761_s24  ;;  %p165_p0 = scmp.ne.s32.totalorder %s2696_s20, %s2692_s19 }
   0x6   : > { %p153_p1 = scmp.eq.s32.totalorder %s152_s26, 0  ;;  %p166_p2 = scmp.eq.s32.totalorder %s2757_s22, 1 }
   0x7   : > { %p171_p3 = scmp.ne.s32.totalorder %s2692_s19, %s2688_s18  ;;  %p172_p4 = scmp.eq.s32.totalorder %s2247_s23, 1 }
   0x8   : > { %s2772_s27 = scalar_select %p153_p1, %s2696_s20, %s155_s25  }
   0x9   : > { %p2774_p5 = por %p166_p2, %p165_p0  ;;  %p2778_p6 = por %p172_p4, %p171_p3 }
   0xa   : > { %p2250_p7 = scmp.ge.s32.totalorder %s2700_s21, 1  ;;  %p228_p8 = scmp.lt.s32.totalorder %s2700_s21, 3 }
   0xc   : > { %p229_p9 = pnand %p2250_p7, %p228_p8 }
   0xe   : > { %232 = sbr.rel (%p229_p9) target bundleno = 1022 (0x3fe), region = 40 }
  0x13   : > { %p273_p10 = scmp.lt.s32.totalorder %s2757_s22, 1  ;;  %vm847_vm0 = vcmask 23552   ;;  %s2702_s10 = smov 127   ;;  %v4354_v56 = vmov 0   ;;  %vm2113_vm9 = vcmask 130048   ;;  %vm1943_vm15 = vcmask 1040384  }
  0x14   : > { %s2703_s17 = smov 126   ;;  %2622 = vset.pattern.permute.xlu1 %v4354_v56 }
  0x15   : > { %s2786_s30 = scalar_select %p273_p10, %s2757_s22, 1 }
  0x17   : > { %s2789_s6 = sshll.u32 %s2786_s30, 7  ;;  %s2351_s23 = sshll.u32 %s2786_s30, 4 }
  0x18   : > { %s2795_s9 = scalar_lea.vmem %s4348_s0, %s2789_s6  ;;  %s2849_s13 = scalar_lea.vmem %s4349_s1, %s2789_s6 }
  0x19   : > { %v2798_v0 = vld [vmem:[%s2795_s9 + $0x10] sm:$0xff]  ;;  %v296_v1 = vld [vmem:[%s2795_s9] sm:$0xff]  ;;  %v2802_v2 = vld [vmem:[%s2795_s9 + $0x18] sm:$0xff]  ;;  %s2983_s16 = scalar_lea.vmem %s4350_s2, %s2789_s6  ;;  %s295_s6 = scalar_lea.vmem %s4352_s4, %s2351_s23 }
  0x1a   : > { %4434 = vst [vmem:[#allocation5_spill] sm:$0xff] %v2798_v0  ;;  %4435 = vst [vmem:[#allocation6_spill] sm:$0xff] %v2802_v2  ;;  %v2806_v3 = vmul.f32 %v2798_v0, %v2798_v0  ;;  %v2808_v4 = vmul.f32 %v296_v1, %v296_v1  ;;  %v2811_v5 = vld [vmem:[%s2795_s9 + $0x8] sm:$0xff]  ;;  %2468 = vmatprep.mubr.msk.f32.mxu0 %vm847_vm0, %v296_v1  ;;  %2524 = vmatprep.mubr.msk.f32.mxu1 %vm847_vm0, %v296_v1  ;;  %v2831_v9 = vld [vmem:[%s2795_s9 + $0x20] sm:$0xff] }
  0x1b   : > { %4436 = vst [vmem:[#allocation7_spill] sm:$0xff] %v2811_v5  ;;  %v2821_v6 = vmul.f32 %v2802_v2, %v2802_v2  ;;  %v2825_v7 = vmul.f32 %v2811_v5, %v2811_v5  ;;  %v2828_v8 = vld [vmem:[%s2795_s9 + $0x28] sm:$0xff]  ;;  %4438 = vst [vmem:[#allocation9_spill] sm:$0xff] %v2831_v9  ;;  %v2843_v11 = vmul.f32 %v2831_v9, %v2831_v9  ;;  %v2852_v12 = vld [vmem:[%s2795_s9 + $0x38] sm:$0xff] }
  0x1c   : > { %383 = vrot.lane.b32.xlu1 %v2806_v3, %s2702_s10  ;;  %379 = vrot.lane.b32.xlu0 %v2808_v4, %s2702_s10  ;;  %4437 = vst [vmem:[#allocation8_spill] sm:$0xff] %v2828_v8  ;;  %v2839_v10 = vmul.f32 %v2828_v8, %v2828_v8  ;;  %4439 = vst [vmem:[#allocation10_spill] sm:$0xff] %v2852_v12  ;;  %v2855_v13 = vld [vmem:[%s2795_s9 + $0x30] sm:$0xff]  ;;  %v2858_v14 = vld [vmem:[%s2849_s13 + $0x78] sm:$0xff]  ;;  %v2873_v16 = vmul.f32 %v2852_v12, %v2852_v12 }
  0x1d   : > { %4440 = vst [vmem:[#allocation11_spill] sm:$0xff] %v2855_v13  ;;  %4441 = vst [vmem:[#allocation12_spill] sm:$0xff] %v2858_v14  ;;  %2436 = vmatprep.subr.msk.mxu0 %vm847_vm0, %v2858_v14  ;;  %v2863_v15 = vld [vmem:[%s2849_s13 + $0x70] sm:$0xff]  ;;  %v2877_v17 = vmul.f32 %v2855_v13, %v2855_v13  ;;  %v2880_v18 = vld [vmem:[%s2795_s9 + $0x48] sm:$0xff] }
  0x1e   : > { %4442 = vst [vmem:[#allocation13_spill] sm:$0xff] %v2863_v15  ;;  %2437 = vmatpush3.xpose.msk.msra.mxu0 %vm847_vm0, %v2858_v14  ;;  %4443 = vst [vmem:[#allocation14_spill] sm:$0xff] %v2880_v18  ;;  %v2883_v19 = vld [vmem:[%s2795_s9 + $0x40] sm:$0xff]  ;;  %v2888_v20 = vld [vmem:[%s2849_s13 + $0x68] sm:$0xff]  ;;  %v2898_v21 = vmul.f32 %v2880_v18, %v2880_v18 }
  0x1f   : > { %4444 = vst [vmem:[#allocation15_spill] sm:$0xff] %v2883_v19  ;;  %2438 = vmatprep.subr.msk.mxu0 %vm847_vm0, %v2863_v15  ;;  %4445 = vst [vmem:[#allocation16_spill] sm:$0xff] %v2888_v20  ;;  %v2902_v22 = vmul.f32 %v2883_v19, %v2883_v19  ;;  %v2905_v23 = vld [vmem:[%s2795_s9 + $0x58] sm:$0xff]  ;;  %v2908_v24 = vld [vmem:[%s2795_s9 + $0x50] sm:$0xff]  ;;  %v3209_v1 = vmul.f32 %v2888_v20, %v2888_v20 }
  0x20   : > { %385 = vrot.lane.b32.xlu1 %v2821_v6, %s2702_s10  ;;  %381 = vrot.lane.b32.xlu0 %v2825_v7, %s2702_s10  ;;  %4446 = vst [vmem:[#allocation17_spill] sm:$0xff] %v2905_v23  ;;  %4447 = vst [vmem:[#allocation18_spill] sm:$0xff] %v2908_v24  ;;  %v2913_v25 = vld [vmem:[%s2849_s13 + $0x60] sm:$0xff]  ;;  %v2923_v26 = vmul.f32 %v2905_v23, %v2905_v23  ;;  %v2927_v27 = vmul.f32 %v2908_v24, %v2908_v24  ;;  %v2930_v28 = vld [vmem:[%s2795_s9 + $0x68] sm:$0xff] }
  0x21   : > { %4448 = vst [vmem:[#allocation19_spill] sm:$0xff] %v2913_v25  ;;  %4449 = vst [vmem:[#allocation20_spill] sm:$0xff] %v2930_v28  ;;  %v2933_v29 = vld [vmem:[%s2795_s9 + $0x60] sm:$0xff]  ;;  %v2945_v30 = vmul.f32 %v2930_v28, %v2930_v28  ;;  %v2952_v32 = vld [vmem:[%s2849_s13 + $0x58] sm:$0xff]  ;;  %v3213_v56 = vmul.f32 %v2913_v25, %v2913_v25 }
  0x22   : > { %2439 = vmatpush3.xpose.msk.msra.mxu0 %vm847_vm0, %v2863_v15  ;;  %4450 = vst [vmem:[#allocation21_spill] sm:$0xff] %v2933_v29  ;;  %v2949_v31 = vmul.f32 %v2933_v29, %v2933_v29  ;;  %4453 = vst [vmem:[#allocation24_spill] sm:$0xff] %v2952_v32  ;;  %v2955_v33 = vld [vmem:[%s2795_s9 + $0x78] sm:$0xff]  ;;  %v2958_v34 = vld [vmem:[%s2795_s9 + $0x70] sm:$0xff]  ;;  %v3193_v62 = vmul.f32 %v2952_v32, %v2952_v32  ;;  %s290_s9 = scalar_lea.vmem %s4351_s3, %s2786_s30  ;;  %s271_s30 = sand.u32 1, %s2692_s19  }
  0x23   : > { %2440 = vmatprep.subr.msk.mxu0 %vm847_vm0, %v2888_v20  ;;  %4451 = vst [vmem:[#allocation22_spill] sm:$0xff] %v2945_v30  ;;  %4454 = vst [vmem:[#allocation25_spill] sm:$0xff] %v2955_v33  ;;  %v2970_v35 = vmul.f32 %v2955_v33, %v2955_v33  ;;  %v2974_v36 = vmul.f32 %v2958_v34, %v2958_v34  ;;  %v2977_v37 = vld [vmem:[%s2849_s13 + $0x50] sm:$0xff]  ;;  %v2988_v38 = vld [vmem:[%s2983_s16 + $0x78] sm:$0xff]  ;;  %s272_s11 = scalar_lea.vmem [#allocation2], %s271_s30 }
  0x24   : > { %389 = vrot.lane.b32.xlu1 %v2839_v10, %s2702_s10  ;;  %387 = vrot.lane.b32.xlu0 %v2843_v11, %s2702_s10  ;;  %4452 = vst [vmem:[#allocation23_spill] sm:$0xff] %v2949_v31  ;;  %4455 = vst [vmem:[#allocation26_spill] sm:$0xff] %v2958_v34  ;;  %v3001_v39 = vld [vmem:[%s2849_s13 + $0x48] sm:$0xff]  ;;  %v3012_v40 = vld [vmem:[%s2849_s13 + $0x40] sm:$0xff]  ;;  %v3197_v63 = vmul.f32 %v2977_v37, %v2977_v37  ;;  %s2147_s12 = sshll.u32 %s272_s11, 4  ;;  %s2148_s12 = int_to_ptr.vmem [resolvable:$true] %s2147_s12 }
  0x25   : > { %4456 = vst [vmem:[#allocation27_spill] sm:$0xff] %v2970_v35  ;;  %4457 = vst [vmem:[#allocation28_spill] sm:$0xff] %v2974_v36  ;;  %2492 = vmatprep.subr.msk.mxu1 %vm847_vm0, %v2988_v38  ;;  %v3023_v41 = vld [vmem:[%s2849_s13 + $0x38] sm:$0xff]  ;;  %v3034_v42 = vld [vmem:[%s2849_s13 + $0x30] sm:$0xff]  ;;  %v3175_v60 = vmul.f32 %v3001_v39, %v3001_v39  ;;  %v3179_v61 = vmul.f32 %v3012_v40, %v3012_v40 }
  0x26   : > { %2441 = vmatpush3.xpose.msk.msra.mxu0 %vm847_vm0, %v2888_v20  ;;  %4458 = vst [vmem:[#allocation29_spill] sm:$0xff] %v2977_v37  ;;  %2493 = vmatpush3.xpose.msk.msra.mxu1 %vm847_vm0, %v2988_v38  ;;  %4459 = vst [vmem:[#allocation30_spill] sm:$0xff] %v3001_v39  ;;  %v3045_v43 = vld [vmem:[%s2849_s13 + $0x28] sm:$0xff]  ;;  %v3056_v44 = vld [vmem:[%s2849_s13 + $0x20] sm:$0xff]  ;;  %v3153_v57 = vmul.f32 %v3023_v41, %v3023_v41  ;;  %v3157_v58 = vmul.f32 %v3034_v42, %v3034_v42 }
  0x27   : > { %2442 = vmatprep.subr.msk.mxu0 %vm847_vm0, %v2913_v25  ;;  %4460 = vst [vmem:[#allocation31_spill] sm:$0xff] %v3012_v40  ;;  %4461 = vst [vmem:[#allocation32_spill] sm:$0xff] %v3023_v41  ;;  %v3067_v45 = vld [vmem:[%s2849_s13 + $0x18] sm:$0xff]  ;;  %v3078_v46 = vld [vmem:[%s2849_s13 + $0x10] sm:$0xff]  ;;  %v3132_v53 = vmul.f32 %v3045_v43, %v3045_v43  ;;  %v3136_v54 = vmul.f32 %v3056_v44, %v3056_v44 }
  0x28   : > { %393 = vrot.lane.b32.xlu1 %v2873_v16, %s2702_s10  ;;  %391 = vrot.lane.b32.xlu0 %v2877_v17, %s2702_s10  ;;  %4462 = vst [vmem:[#allocation33_spill] sm:$0xff] %v3034_v42  ;;  %4463 = vst [vmem:[#allocation34_spill] sm:$0xff] %v3045_v43  ;;  %v3081_v47 = vld [vmem:[%s2849_s13 + $0x8] sm:$0xff]  ;;  %v3084_v48 = vld [vmem:[%s2849_s13] sm:$0xff]  ;;  %v3113_v51 = vmul.f32 %v3067_v45, %v3067_v45  ;;  %v3117_v52 = vmul.f32 %v3078_v46, %v3078_v46 }
  0x29   : > { %4464 = vst [vmem:[#allocation35_spill] sm:$0xff] %v3056_v44  ;;  %4465 = vst [vmem:[#allocation36_spill] sm:$0xff] %v3067_v45  ;;  %v3096_v49 = vmul.f32 %v3081_v47, %v3081_v47  ;;  %v3100_v50 = vmul.f32 %v3084_v48, %v3084_v48  ;;  %v3138_v55 = vld [vmem:[%s295_s6 + $0x8] sm:$0xff]  ;;  %v3159_v59 = vld [vmem:[%s295_s6] sm:$0xff] }
  0x2a   : > { %2443 = vmatpush3.xpose.msk.msra.mxu0 %vm847_vm0, %v2913_v25  ;;  %4466 = vst [vmem:[#allocation37_spill] sm:$0xff] %v3078_v46  ;;  %4467 = vst [vmem:[#allocation38_spill] sm:$0xff] %v3081_v47  ;;  %v3286_v20 = vld [vmem:[%s2983_s16 + $0x8] sm:$0xff] }
  0x2b   : > { %2444 = vmatprep.subr.msk.mxu0 %vm847_vm0, %v2952_v32  ;;  %4468 = vst [vmem:[#allocation39_spill] sm:$0xff] %v3084_v48  ;;  %4469 = vst [vmem:[#allocation40_spill] sm:$0xff] %v3159_v59 }
  0x2c   : > { %397 = vrot.lane.b32.xlu1 %v2898_v21, %s2702_s10  ;;  %395 = vrot.lane.b32.xlu0 %v2902_v22, %s2702_s10  ;;  %4470 = vst [vmem:[#allocation41_spill] sm:$0xff] %v3175_v60  ;;  %4471 = vst [vmem:[#allocation42_spill] sm:$0xff] %v3179_v61 }
  0x2d   : > { %4472 = vst [vmem:[#allocation43_spill] sm:$0xff] %v3193_v62  ;;  %4473 = vst [vmem:[#allocation44_spill] sm:$0xff] %v3197_v63 }
  0x2e   : > { %2445 = vmatpush3.xpose.msk.msra.mxu0 %vm847_vm0, %v2952_v32  ;;  %4474 = vst [vmem:[#allocation45_spill] sm:$0xff] %v3209_v1  ;;  %4475 = vst [vmem:[#allocation46_spill] sm:$0xff] %v3213_v56 }
  0x2f   : > { %2446 = vmatprep.subr.msk.mxu0 %vm847_vm0, %v2977_v37  ;;  %4478 = vst [vmem:[#allocation49_spill] sm:$0xff] %v3286_v20 }
  0x30   : > { %401 = vrot.lane.b32.xlu1 %v2923_v26, %s2702_s10  ;;  %399 = vrot.lane.b32.xlu0 %v2927_v27, %s2702_s10 }
  0x32   : > { %2447 = vmatpush3.xpose.msk.msra.mxu0 %vm847_vm0, %v2977_v37  ;;  %v3298_v37 = vmul.f32 %v3286_v20, %v3286_v20 }
  0x33   : > { %2448 = vmatprep.subr.msk.mxu0 %vm847_vm0, %v3001_v39 }
  0x34   : > { %405 = vrot.lane.b32.xlu1 %v2945_v30, %s2702_s10  ;;  %403 = vrot.lane.b32.xlu0 %v2949_v31, %s2702_s10  ;;  %4479 = vst [vmem:[#allocation50_spill] sm:$0xff] %v3298_v37 }
  0x36   : > { %2449 = vmatpush3.xpose.msk.msra.mxu0 %vm847_vm0, %v3001_v39  ;;  %v3301_v39 = vld [vmem:[%s2983_s16 + $0x18] sm:$0xff] }
  0x37   : > { %2450 = vmatprep.subr.msk.mxu0 %vm847_vm0, %v3012_v40  ;;  %4480 = vst [vmem:[#allocation51_spill] sm:$0xff] %v3301_v39 }
  0x38   : > { %409 = vrot.lane.b32.xlu1 %v2970_v35, %s2702_s10  ;;  %407 = vrot.lane.b32.xlu0 %v2974_v36, %s2702_s10 }
  0x3a   : > { %2451 = vmatpush3.xpose.msk.msra.mxu0 %vm847_vm0, %v3012_v40 }
  0x3b   : > { %2452 = vmatprep.subr.msk.mxu0 %vm847_vm0, %v3023_v41 }
  0x3c   : > { %445 = vrot.lane.b32.xlu1 %v2825_v7, %s2703_s17  ;;  %443 = vrot.lane.b32.xlu0 %v2808_v4, %s2703_s17 }
  0x3e   : > { %2453 = vmatpush3.xpose.msk.msra.mxu0 %vm847_vm0, %v3023_v41 }
  0x3f   : > { %2454 = vmatprep.subr.msk.mxu0 %vm847_vm0, %v3034_v42 }
  0x40   : > { %449 = vrot.lane.b32.xlu1 %v2821_v6, %s2703_s17  ;;  %447 = vrot.lane.b32.xlu0 %v2806_v3, %s2703_s17 }
  0x42   : > { %2455 = vmatpush3.xpose.msk.msra.mxu0 %vm847_vm0, %v3034_v42  ;;  %v3311_v42 = vmul.f32 %v3301_v39, %v3301_v39 }
  0x43   : > { %2456 = vmatprep.subr.msk.mxu0 %vm847_vm0, %v3045_v43 }
  0x44   : > { %453 = vrot.lane.b32.xlu1 %v2839_v10, %s2703_s17  ;;  %451 = vrot.lane.b32.xlu0 %v2843_v11, %s2703_s17  ;;  %4481 = vst [vmem:[#allocation52_spill] sm:$0xff] %v3311_v42 }
  0x46   : > { %2457 = vmatpush3.xpose.msk.msra.mxu0 %vm847_vm0, %v3045_v43  ;;  %v3314_v43 = vld [vmem:[%s2983_s16 + $0x28] sm:$0xff] }
  0x47   : > { %2458 = vmatprep.subr.msk.mxu0 %vm847_vm0, %v3056_v44  ;;  %4482 = vst [vmem:[#allocation53_spill] sm:$0xff] %v3314_v43 }
  0x48   : > { %457 = vrot.lane.b32.xlu1 %v2873_v16, %s2703_s17  ;;  %455 = vrot.lane.b32.xlu0 %v2877_v17, %s2703_s17 }
  0x4a   : > { %2459 = vmatpush3.xpose.msk.msra.mxu0 %vm847_vm0, %v3056_v44 }
  0x4b   : > { %2460 = vmatprep.subr.msk.mxu0 %vm847_vm0, %v3067_v45 }
  0x4c   : > { %461 = vrot.lane.b32.xlu1 %v2898_v21, %s2703_s17  ;;  %459 = vrot.lane.b32.xlu0 %v2902_v22, %s2703_s17 }
  0x4e   : > { %2461 = vmatpush3.xpose.msk.msra.mxu0 %vm847_vm0, %v3067_v45 }
  0x4f   : > { %2462 = vmatprep.subr.msk.mxu0 %vm847_vm0, %v3078_v46 }
  0x50   : > { %465 = vrot.lane.b32.xlu1 %v2923_v26, %s2703_s17  ;;  %463 = vrot.lane.b32.xlu0 %v2927_v27, %s2703_s17 }
  0x52   : > { %2463 = vmatpush3.xpose.msk.msra.mxu0 %vm847_vm0, %v3078_v46  ;;  %v3324_v46 = vmul.f32 %v3314_v43, %v3314_v43 }
  0x53   : > { %2464 = vmatprep.subr.msk.mxu0 %vm847_vm0, %v3081_v47 }
  0x54   : > { %469 = vrot.lane.b32.xlu1 %v2945_v30, %s2703_s17  ;;  %467 = vrot.lane.b32.xlu0 %v2949_v31, %s2703_s17  ;;  %4483 = vst [vmem:[#allocation54_spill] sm:$0xff] %v3324_v46 }
  0x56   : > { %2465 = vmatpush3.xpose.msk.msra.mxu0 %vm847_vm0, %v3081_v47  ;;  %v3327_v47 = vld [vmem:[%s2983_s16 + $0x38] sm:$0xff] }
  0x57   : > { %2466 = vmatprep.subr.msk.mxu0 %vm847_vm0, %v3084_v48 }
  0x58   : > { %473 = vrot.lane.b32.xlu1 %v2970_v35, %s2703_s17  ;;  %471 = vrot.lane.b32.xlu0 %v2974_v36, %s2703_s17  ;;  %v3225_v35 = vmul.f32 %v2858_v14, %v2858_v14  ;;  %v3229_v36 = vmul.f32 %v2863_v15, %v2863_v15 }
  0x5a   : > { %2467 = vmatpush3.xpose.msk.msra.mxu0 %vm847_vm0, %v3084_v48  ;;  %4476 = vst [vmem:[#allocation47_spill] sm:$0xff] %v3225_v35  ;;  %4477 = vst [vmem:[#allocation48_spill] sm:$0xff] %v3229_v36 }
  0x5b   : > { %2572 = vmatprep.subr.msk.mxu0 %vm847_vm0, %v3138_v55 }
  0x5c   : > { %541 = vrot.lane.b32.xlu1 %v3096_v49, %s2702_s10  ;;  %539 = vrot.lane.b32.xlu0 %v3100_v50, %s2702_s10 }
  0x5d   : > { %2469 = vmatmul.mubr.msk.f32.vlgmr.msra.gmra.mxu0 %vm847_vm0, %v2811_v5 }
  0x5e   : > { %2471 = vmatprep.mubr.msk.f32.mxu0 %vm847_vm0, %v2798_v0  ;;  %2573 = vmatpush3.xpose.msk.msra.mxu0 %vm847_vm0, %v3138_v55  ;;  %v3378_v0 = vmul.f32 %v2988_v38, %v2988_v38 }
  0x5f   : > { %2574 = vmatprep.subr.msk.mxu0 %vm847_vm0, %v3159_v59 }
  0x60   : > { %545 = vrot.lane.b32.xlu1 %v3113_v51, %s2702_s10  ;;  %543 = vrot.lane.b32.xlu0 %v3117_v52, %s2702_s10  ;;  %4492 = vst [vmem:[#allocation63_spill] sm:$0xff] %v3378_v0 }
  0x61   : > { %2472 = vmatmul.mubr.msk.f32.gmra.mxu0 %vm847_vm0, %v2802_v2 }
  0x62   : > { %2474 = vmatprep.mubr.msk.f32.mxu0 %vm847_vm0, %v2831_v9  ;;  %2575 = vmatpush3.xpose.msk.msra.mxu0 %vm847_vm0, %v3159_v59 }
  0x64   : > { %549 = vrot.lane.b32.xlu1 %v3132_v53, %s2702_s10  ;;  %547 = vrot.lane.b32.xlu0 %v3136_v54, %s2702_s10 }
  0x65   : > { %2475 = vmatmul.mubr.msk.f32.gmra.mxu0 %vm847_vm0, %v2828_v8 }
  0x66   : > { %2477 = vmatprep.mubr.msk.f32.mxu0 %vm847_vm0, %v2855_v13  ;;  %v3366_v13 = vld [vmem:[%s2983_s16 + $0x68] sm:$0xff] }
  0x67   : > { %v3372_v2 = vmul.f32 %v3366_v13, %v3366_v13 }
  0x68   : > { %553 = vrot.lane.b32.xlu1 %v3153_v57, %s2702_s10  ;;  %551 = vrot.lane.b32.xlu0 %v3157_v58, %s2702_s10 }
  0x69   : > { %2478 = vmatmul.mubr.msk.f32.gmra.mxu0 %vm847_vm0, %v2852_v12  ;;  %4491 = vst [vmem:[#allocation62_spill] sm:$0xff] %v3372_v2 }
  0x6a   : > { %2480 = vmatprep.mubr.msk.f32.mxu0 %vm847_vm0, %v2883_v19 }
  0x6c   : > { %557 = vrot.lane.b32.xlu1 %v3175_v60, %s2702_s10  ;;  %555 = vrot.lane.b32.xlu0 %v3179_v61, %s2702_s10 }
  0x6d   : > { %2481 = vmatmul.mubr.msk.f32.gmra.mxu0 %vm847_vm0, %v2880_v18  ;;  %v3353_v18 = vld [vmem:[%s2983_s16 + $0x58] sm:$0xff] }
  0x6e   : > { %2483 = vmatprep.mubr.msk.f32.mxu0 %vm847_vm0, %v2908_v24 }
  0x70   : > { %561 = vrot.lane.b32.xlu1 %v3193_v62, %s2702_s10  ;;  %559 = vrot.lane.b32.xlu0 %v3197_v63, %s2702_s10 }
  0x71   : > { %2484 = vmatmul.mubr.msk.f32.gmra.mxu0 %vm847_vm0, %v2905_v23 }
  0x72   : > { %2486 = vmatprep.mubr.msk.f32.mxu0 %vm847_vm0, %v2933_v29 }
  0x74   : > { %565 = vrot.lane.b32.xlu1 %v3209_v1, %s2702_s10  ;;  %563 = vrot.lane.b32.xlu0 %v3213_v56, %s2702_s10 }
  0x75   : > { %2487 = vmatmul.mubr.msk.f32.gmra.mxu0 %vm847_vm0, %v2930_v28  ;;  %v3340_v28 = vld [vmem:[%s2983_s16 + $0x48] sm:$0xff] }
  0x76   : > { %2489 = vmatprep.mubr.msk.f32.mxu0 %vm847_vm0, %v2958_v34  ;;  %v3337_v34 = vmul.f32 %v3327_v47, %v3327_v47  ;;  %v3350_v24 = vmul.f32 %v3340_v28, %v3340_v28 }
  0x78   : > { %569 = vrot.lane.b32.xlu1 %v3225_v35, %s2702_s10  ;;  %567 = vrot.lane.b32.xlu0 %v3229_v36, %s2702_s10  ;;  %4484 = vst [vmem:[#allocation55_spill] sm:$0xff] %v3337_v34  ;;  %4487 = vst [vmem:[#allocation58_spill] sm:$0xff] %v3350_v24 }
  0x79   : > { %2490 = vmatmul.mubr.msk.f32.gmra.mxu0 %vm847_vm0, %v2955_v33 }
  0x7a   : > { %2576 = vmatprep.mubr.msk.f32.mxu0 %vm847_vm0, %v3159_v59 }
  0x7c   : > { %605 = vrot.lane.b32.xlu1 %v3096_v49, %s2703_s17  ;;  %603 = vrot.lane.b32.xlu0 %v3100_v50, %s2703_s17 }
  0x7d   : > { %2577 = vmatmul.mubr.msk.f32.vlgmr.msra.gmra.mxu0 %vm847_vm0, %v3138_v55 }
  0x80   : > { %609 = vrot.lane.b32.xlu1 %v3113_v51, %s2703_s17  ;;  %607 = vrot.lane.b32.xlu0 %v3117_v52, %s2703_s17 }
  0x84   : > { %613 = vrot.lane.b32.xlu1 %v3132_v53, %s2703_s17  ;;  %611 = vrot.lane.b32.xlu0 %v3136_v54, %s2703_s17 }
  0x88   : > { %617 = vrot.lane.b32.xlu1 %v3153_v57, %s2703_s17  ;;  %615 = vrot.lane.b32.xlu0 %v3157_v58, %s2703_s17 }
  0x8c   : > { %621 = vrot.lane.b32.xlu1 %v3175_v60, %s2703_s17  ;;  %619 = vrot.lane.b32.xlu0 %v3179_v61, %s2703_s17 }
  0x8e   : > { %v3269_v30 = vpop.permute.xlu1 %383  ;;  %v3271_v59 = vpop.permute.xlu0 %379 }
  0x90   : > { %625 = vrot.lane.b32.xlu1 %v3193_v62, %s2703_s17  ;;  %623 = vrot.lane.b32.xlu0 %v3197_v63, %s2703_s17 }
  0x92   : > { %v3277_v14 = vpop.permute.xlu1 %385  ;;  %v3279_v15 = vpop.permute.xlu0 %381 }
  0x94   : > { %629 = vrot.lane.b32.xlu1 %v3209_v1, %s2703_s17  ;;  %627 = vrot.lane.b32.xlu0 %v3213_v56, %s2703_s17 }
  0x96   : > { %v3288_v25 = vpop.permute.xlu1 %389  ;;  %v3290_v32 = vpop.permute.xlu0 %387 }
  0x98   : > { %633 = vrot.lane.b32.xlu1 %v3225_v35, %s2703_s17  ;;  %631 = vrot.lane.b32.xlu0 %v3229_v36, %s2703_s17 }
  0x9a   : > { %v3303_v40 = vpop.permute.xlu1 %393  ;;  %v3305_v41 = vpop.permute.xlu0 %391 }
  0x9c   : > { %701 = vrot.lane.b32.xlu1 %v3298_v37, %s2702_s10 }
  0x9e   : > { %v3316_v44 = vpop.permute.xlu1 %397  ;;  %v3318_v45 = vpop.permute.xlu0 %395 }
  0xa0   : > { %705 = vrot.lane.b32.xlu1 %v3311_v42, %s2702_s10 }
  0xa2   : > { %v3329_v48 = vpop.permute.xlu1 %401  ;;  %v3331_v33 = vpop.permute.xlu0 %399 }
  0xa4   : > { %709 = vrot.lane.b32.xlu1 %v3324_v46, %s2702_s10 }
  0xa6   : > { %v3342_v29 = vpop.permute.xlu1 %405  ;;  %v3344_v23 = vpop.permute.xlu0 %403 }
  0xa7   : > { %4485 = vst [vmem:[#allocation56_spill] sm:$0xff] %v3342_v29  ;;  %4486 = vst [vmem:[#allocation57_spill] sm:$0xff] %v3344_v23  ;;  %v3363_v29 = vmul.f32 %v3353_v18, %v3353_v18 }
  0xa8   : > { %713 = vrot.lane.b32.xlu1 %v3337_v34, %s2702_s10 }
  0xa9   : > { %4490 = vst [vmem:[#allocation61_spill] sm:$0xff] %v3363_v29 }
  0xaa   : > { %v3355_v19 = vpop.permute.xlu1 %409  ;;  %v3357_v12 = vpop.permute.xlu0 %407 }
  0xab   : > { %4488 = vst [vmem:[#allocation59_spill] sm:$0xff] %v3355_v19  ;;  %4489 = vst [vmem:[#allocation60_spill] sm:$0xff] %v3357_v12 }
  0xac   : > { %717 = vrot.lane.b32.xlu1 %v3350_v24, %s2702_s10 }
  0xae   : > { %v446_v8 = vpop.permute.xlu1 %445  ;;  %v444_v9 = vpop.permute.xlu0 %443 }
  0xb0   : > { %721 = vrot.lane.b32.xlu1 %v3363_v29, %s2702_s10 }
  0xb2   : > { %v450_v19 = vpop.permute.xlu1 %449  ;;  %v448_v12 = vpop.permute.xlu0 %447 }
  0xb4   : > { %725 = vrot.lane.b32.xlu1 %v3372_v2, %s2702_s10 }
  0xb6   : > { %v3380_v5 = vpop.permute.xlu1 %453  ;;  %v452_v35 = vpop.permute.xlu0 %451 }
  0xb8   : > { %729 = vrot.lane.b32.xlu1 %v3378_v0, %s2702_s10 }
  0xba   : > { %v3384_v36 = vpop.permute.xlu1 %457  ;;  %v3386_v20 = vpop.permute.xlu0 %455 }
  0xbc   : > { %765 = vrot.lane.b32.xlu1 %v3298_v37, %s2703_s17 }
  0xbe   : > { %v3390_v1 = vpop.permute.xlu1 %461  ;;  %v3392_v56 = vpop.permute.xlu0 %459 }
  0xc0   : > { %769 = vrot.lane.b32.xlu1 %v3311_v42, %s2703_s17 }
  0xc2   : > { %v3396_v38 = vpop.permute.xlu1 %465  ;;  %v3398_v39 = vpop.permute.xlu0 %463 }
  0xc3   : > { %4493 = vst [vmem:[#allocation64_spill] sm:$0xff] %v3396_v38  ;;  %v428_v38 = vadd.f32 %v3279_v15, %v2825_v7 }
  0xc4   : > { %773 = vrot.lane.b32.xlu1 %v3324_v46, %s2703_s17 }
  0xc5   : > { %v492_v61 = vadd.f32 %v446_v8, %v428_v38 }
  0xc6   : > { %v3402_v62 = vpop.permute.xlu1 %469  ;;  %v3404_v63 = vpop.permute.xlu0 %467 }
  0xc7   : > { %4494 = vst [vmem:[#allocation65_spill] sm:$0xff] %v3402_v62  ;;  %4495 = vst [vmem:[#allocation66_spill] sm:$0xff] %v3404_v63  ;;  %v427_v63 = vadd.f32 %v3271_v59, %v2808_v4  ;;  %v429_v4 = vadd.f32 %v3269_v30, %v2806_v3  ;;  %v431_v3 = vadd.f32 %v3290_v32, %v2843_v11  ;;  %v3483_v32 = vld [vmem:[%s2983_s16 + $0x60] sm:$0xff] }
  0xc8   : > { %777 = vrot.lane.b32.xlu1 %v3337_v34, %s2703_s17  ;;  %v432_v11 = vadd.f32 %v3288_v25, %v2839_v10  ;;  %v433_v10 = vadd.f32 %v3305_v41, %v2877_v17 }
  0xc9   : > { %v493_v59 = vadd.f32 %v448_v12, %v429_v4  ;;  %v495_v12 = vadd.f32 %v452_v35, %v431_v3 }
  0xca   : > { %v3408_v37 = vpop.permute.xlu1 %473  ;;  %v3410_v43 = vpop.permute.xlu0 %471  ;;  %v496_v35 = vadd.f32 %v3380_v5, %v432_v11  ;;  %v497_v5 = vadd.f32 %v3386_v20, %v433_v10 }
  0xcb   : > { %4496 = vst [vmem:[#allocation67_spill] sm:$0xff] %v3408_v37  ;;  %4497 = vst [vmem:[#allocation68_spill] sm:$0xff] %v3410_v43 }
  0xcc   : > { %781 = vrot.lane.b32.xlu1 %v3350_v24, %s2703_s17  ;;  %v3426_v24 = vmul.f32 %v3138_v55, %v3138_v55 }
  0xce   : > { %v542_v42 = vpop.permute.xlu1 %541  ;;  %v540_v60 = vpop.permute.xlu0 %539  ;;  %4498 = vst [vmem:[#allocation69_spill] sm:$0xff] %v3426_v24 }
  0xd0   : > { %785 = vrot.lane.b32.xlu1 %v3363_v29, %s2703_s17 }
  0xd2   : > { %v546_v46 = vpop.permute.xlu1 %545  ;;  %v544_v23 = vpop.permute.xlu0 %543 }
  0xd3   : > { %v589_v30 = vadd.f32 %v544_v23, %v3117_v52  ;;  %v590_v23 = vadd.f32 %v546_v46, %v3113_v51  ;;  %v3509_v46 = vld [vmem:[%s2983_s16 + $0x50] sm:$0xff] }
  0xd4   : > { %789 = vrot.lane.b32.xlu1 %v3372_v2, %s2703_s17 }
  0xd6   : > { %v3418_v62 = vpop.permute.xlu1 %549  ;;  %v3420_v34 = vpop.permute.xlu0 %547 }
  0xd7   : > { %v591_v41 = vadd.f32 %v3420_v34, %v3136_v54  ;;  %v592_v34 = vadd.f32 %v3418_v62, %v3132_v53  ;;  %v3536_v54 = vld [vmem:[%s2983_s16 + $0x40] sm:$0xff] }
  0xd8   : > { %793 = vrot.lane.b32.xlu1 %v3378_v0, %s2703_s17  ;;  %v491_v0 = vadd.f32 %v444_v9, %v427_v63 }
  0xda   : > { %v3428_v37 = vpop.permute.xlu1 %553  ;;  %v3430_v43 = vpop.permute.xlu0 %551 }
  0xdb   : > { %v593_v53 = vadd.f32 %v3430_v43, %v3157_v58  ;;  %v594_v43 = vadd.f32 %v3428_v37, %v3153_v57  ;;  %v4502_v37 = vld [vmem:[#allocation42_spill] sm:$0xff] }
  0xdc   : > { %833 = vrot.lane.b32.xlu1 %v3426_v24, %s2702_s10 }
  0xde   : > { %v3434_v29 = vpop.permute.xlu1 %557  ;;  %v3436_v2 = vpop.permute.xlu0 %555 }
  0xdf   : > { %4499 = vst [vmem:[#allocation70_spill] sm:$0xff] %v3434_v29  ;;  %4500 = vst [vmem:[#allocation71_spill] sm:$0xff] %v3436_v2 }
  0xe0   : > { %841 = vrot.lane.b32.xlu1 %v3426_v24, %s2703_s17  ;;  %v430_v24 = vadd.f32 %v3277_v14, %v2821_v6  ;;  %v588_v6 = vadd.f32 %v542_v42, %v3096_v49 }
  0xe2   : > { %v3442_v55 = vpop.permute.xlu1 %561  ;;  %v3444_v31 = vpop.permute.xlu0 %559  ;;  %v494_v7 = vadd.f32 %v450_v19, %v430_v24 }
  0xe4   : > { %1123 = vperm.xlu1 %2622, %v491_v0   ;;  %v587_v0 = vadd.f32 %v540_v60, %v3100_v50  ;;  %v434_v50 = vadd.f32 %v3303_v40, %v2873_v16  ;;  %v435_v40 = vadd.f32 %v3318_v45, %v2902_v22  ;;  %v436_v22 = vadd.f32 %v3316_v44, %v2898_v21 }
  0xe5   : > { %v437_v44 = vadd.f32 %v3331_v33, %v2927_v27  ;;  %v438_v27 = vadd.f32 %v3329_v48, %v2923_v26  ;;  %v4505_v48 = vld [vmem:[#allocation23_spill] sm:$0xff] }
  0xe6   : > { %v3448_v29 = vpop.permute.xlu1 %565  ;;  %v3450_v2 = vpop.permute.xlu0 %563  ;;  %v498_v20 = vadd.f32 %v3384_v36, %v434_v50  ;;  %v4503_v57 = vld [vmem:[#allocation71_spill] sm:$0xff] }
  0xe7   : > { %4501 = vst [vmem:[#allocation72_spill] sm:$0xff] %v3448_v29  ;;  %v3464_v29 = vld [vmem:[%s2983_s16 + $0x70] sm:$0xff]  ;;  %v595_v62 = vadd.f32 %v4503_v57, %v4502_v37 }
  0xe8   : > { %1128 = vperm.xlu1 %2622, %v492_v61   ;;  %2494 = vmatprep.subr.msk.mxu1 %vm847_vm0, %v3464_v29  ;;  %v4513_v50 = vld [vmem:[#allocation51_spill] sm:$0xff] }
  0xe9   : > { %2495 = vmatpush3.xpose.msk.msra.mxu1 %vm847_vm0, %v3464_v29  ;;  %v4520_v37 = vld [vmem:[#allocation47_spill] sm:$0xff] }
  0xea   : > { %v3454_v9 = vpop.permute.xlu1 %569  ;;  %v3456_v63 = vpop.permute.xlu0 %567  ;;  %2496 = vmatprep.subr.msk.mxu1 %vm847_vm0, %v3366_v13 }
  0xec   : > { %1133 = vperm.xlu1 %2622, %v493_v59  }
  0xed   : > { %2497 = vmatpush3.xpose.msk.msra.mxu1 %vm847_vm0, %v3366_v13 }
  0xee   : > { %v606_v8 = vpop.permute.xlu1 %605  ;;  %v604_v15 = vpop.permute.xlu0 %603  ;;  %2498 = vmatprep.subr.msk.mxu1 %vm847_vm0, %v3483_v32 }
  0xef   : > { %v3461_v38 = vadd.f32 %v604_v15, %v587_v0  ;;  %v3476_v19 = vadd.f32 %v606_v8, %v588_v6  ;;  %v4506_v0 = vld [vmem:[#allocation57_spill] sm:$0xff]  ;;  %v4508_v15 = vld [vmem:[#allocation70_spill] sm:$0xff] }
  0xf0   : > { %1138 = vperm.xlu1 %2622, %v494_v7   ;;  %v439_v7 = vadd.f32 %v4506_v0, %v4505_v48  ;;  %v4507_v8 = vld [vmem:[#allocation41_spill] sm:$0xff] }
  0xf1   : > { %1089 = vxpose.xlu0.b32.start [1/16] (narrow) %v3461_v38, 8  ;;  %2499 = vmatpush3.xpose.msk.msra.mxu1 %vm847_vm0, %v3483_v32  ;;  %v596_v3 = vadd.f32 %v4508_v15, %v4507_v8  ;;  %v4525_v48 = vld [vmem:[#allocation9_spill] sm:$0xff]  ;;  %v4528_v15 = vld [vmem:[#allocation10_spill] sm:$0xff] }
  0xf2   : > { %v610_v14 = vpop.permute.xlu1 %609  ;;  %v608_v24 = vpop.permute.xlu0 %607  ;;  %2500 = vmatprep.subr.msk.mxu1 %vm847_vm0, %v3353_v18 }
  0xf3   : > { %v3490_v49 = vadd.f32 %v608_v24, %v589_v30  ;;  %v3501_v25 = vadd.f32 %v610_v14, %v590_v23  ;;  %v4510_v14 = vld [vmem:[#allocation53_spill] sm:$0xff]  ;;  %v4511_v30 = vld [vmem:[#allocation44_spill] sm:$0xff] }
  0xf4   : > { %1143 = vperm.xlu1 %2622, %v495_v12  }
  0xf5   : > { %1090 = vxpose.xlu0.b32.cont [2/16] (narrow) %v3476_v19, 8  ;;  %2501 = vmatpush3.xpose.msk.msra.mxu1 %vm847_vm0, %v3353_v18  ;;  %v499_v18 = vadd.f32 %v3392_v56, %v435_v40  ;;  %v500_v56 = vadd.f32 %v3390_v1, %v436_v22  ;;  %v3565_v1 = vld [vmem:[%s2983_s16 + $0x30] sm:$0xff] }
  0xf6   : > { %v614_v42 = vpop.permute.xlu1 %613  ;;  %v612_v17 = vpop.permute.xlu0 %611  ;;  %2502 = vmatprep.subr.msk.mxu1 %vm847_vm0, %v3509_v46 }
  0xf7   : > { %v3516_v16 = vadd.f32 %v612_v17, %v591_v41  ;;  %v3528_v52 = vadd.f32 %v614_v42, %v592_v34  ;;  %v3594_v42 = vld [vmem:[%s2983_s16 + $0x20] sm:$0xff] }
  0xf8   : > { %1148 = vperm.xlu1 %2622, %v496_v35   ;;  %v597_v35 = vadd.f32 %v3444_v31, %v4511_v30  ;;  %v4532_v30 = vld [vmem:[#allocation17_spill] sm:$0xff] }
  0xf9   : > { %1091 = vxpose.xlu0.b32.cont [3/16] (narrow) %v3490_v49, 8  ;;  %2503 = vmatpush3.xpose.msk.msra.mxu1 %vm847_vm0, %v3509_v46 }
  0xfa   : > { %v618_v13 = vpop.permute.xlu1 %617  ;;  %2504 = vmatprep.subr.msk.mxu1 %vm847_vm0, %v3340_v28  ;;  %v616_v45 = vpop.permute.xlu0 %615 }
  0xfb   : > { %v3543_v21 = vadd.f32 %v616_v45, %v593_v53  ;;  %v3557_v61 = vadd.f32 %v618_v13, %v594_v43  ;;  %v4517_v45 = vld [vmem:[#allocation49_spill] sm:$0xff] }
  0xfc   : > { %1153 = vperm.xlu1 %2622, %v497_v5   ;;  %v4512_v5 = vld [vmem:[#allocation43_spill] sm:$0xff] }
  0xfd   : > { %1092 = vxpose.xlu0.b32.cont [4/16] (narrow) %v3501_v25, 8  ;;  %2505 = vmatpush3.xpose.msk.msra.mxu1 %vm847_vm0, %v3340_v28  ;;  %v501_v28 = vadd.f32 %v3398_v39, %v437_v44  ;;  %v4504_v39 = vld [vmem:[#allocation64_spill] sm:$0xff]  ;;  %v598_v13 = vadd.f32 %v3442_v55, %v4512_v5  ;;  %v330_v55 = vld [vmem:[%s2983_s16 + $0x10] sm:$0xff] }
  0xfe   : > { %v622_v51 = vpop.permute.xlu1 %621  ;;  %2506 = vmatprep.subr.msk.mxu1 %vm847_vm0, %v3536_v54  ;;  %v620_v33 = vpop.permute.xlu0 %619  ;;  %v502_v4 = vadd.f32 %v4504_v39, %v438_v27  ;;  %v4518_v44 = vld [vmem:[#allocation48_spill] sm:$0xff]  ;;  %v4523_v39 = vld [vmem:[#allocation5_spill] sm:$0xff] }
  0xff   : > { %v3574_v26 = vadd.f32 %v620_v33, %v595_v62  ;;  %v3588_v11 = vadd.f32 %v622_v51, %v596_v3  ;;  %v601_v43 = vadd.f32 %v3456_v63, %v4518_v44  ;;  %v4522_v62 = vld [vmem:[#allocation7_spill] sm:$0xff]  ;;  %v4534_v5 = vld [vmem:[#allocation20_spill] sm:$0xff] }
 0x100   : > { %1158 = vperm.xlu1 %2622, %v498_v20   ;;  %v4514_v20 = vld [vmem:[#allocation46_spill] sm:$0xff]  ;;  %v4529_v3 = vld [vmem:[#allocation15_spill] sm:$0xff] }
 0x101   : > { %1093 = vxpose.xlu0.b32.cont [5/16] (narrow) %v3516_v16, 8  ;;  %2507 = vmatpush3.xpose.msk.msra.mxu1 %vm847_vm0, %v3536_v54  ;;  %v599_v51 = vadd.f32 %v3450_v2, %v4514_v20  ;;  %v4537_v20 = vld [vmem:[#allocation39_spill] sm:$0xff] }
 0x102   : > { %v626_v36 = vpop.permute.xlu1 %625  ;;  %2508 = vmatprep.subr.msk.mxu1 %vm847_vm0, %v3327_v47  ;;  %v624_v24 = vpop.permute.xlu0 %623 }
 0x103   : > { %v3602_v23 = vadd.f32 %v624_v24, %v597_v35  ;;  %v3613_v17 = vadd.f32 %v626_v36, %v598_v13  ;;  %v4516_v36 = vld [vmem:[#allocation72_spill] sm:$0xff]  ;;  %v4533_v35 = vld [vmem:[#allocation21_spill] sm:$0xff] }
 0x104   : > { %1163 = vperm.xlu1 %2622, %v499_v18   ;;  %v4515_v18 = vld [vmem:[#allocation45_spill] sm:$0xff] }
 0x105   : > { %1094 = vxpose.xlu0.b32.cont [6/16] (narrow) %v3528_v52, 8  ;;  %2509 = vmatpush3.xpose.msk.msra.mxu1 %vm847_vm0, %v3327_v47  ;;  %v4509_v47 = vld [vmem:[#allocation66_spill] sm:$0xff]  ;;  %v600_v22 = vadd.f32 %v4516_v36, %v4515_v18  ;;  %v4540_v36 = vld [vmem:[#allocation37_spill] sm:$0xff] }
 0x106   : > { %v630_v60 = vpop.permute.xlu1 %629  ;;  %2510 = vmatprep.subr.msk.mxu1 %vm847_vm0, %v3565_v1  ;;  %v503_v6 = vadd.f32 %v4509_v47, %v439_v7  ;;  %v628_v41 = vpop.permute.xlu0 %627  ;;  %v4527_v7 = vld [vmem:[#allocation11_spill] sm:$0xff]  ;;  %v4539_v18 = vld [vmem:[#allocation38_spill] sm:$0xff] }
 0x107   : > { %v3624_v34 = vadd.f32 %v628_v41, %v599_v51  ;;  %v3634_v53 = vadd.f32 %v630_v60, %v600_v22  ;;  %v602_v60 = vadd.f32 %v3454_v9, %v4520_v37  ;;  %v4524_v9 = vld [vmem:[#allocation6_spill] sm:$0xff]  ;;  %v4536_v41 = vld [vmem:[#allocation25_spill] sm:$0xff]  ;;  %v4541_v22 = vld [vmem:[#allocation36_spill] sm:$0xff] }
 0x108   : > { %1168 = vperm.xlu1 %2622, %v500_v56  }
 0x109   : > { %1095 = vxpose.xlu0.b32.cont [7/16] (narrow) %v3543_v21, 8  ;;  %2511 = vmatpush3.xpose.msk.msra.mxu1 %vm847_vm0, %v3565_v1 }
 0x10a   : > { %v3553_v58 = vpop.permute.xlu1 %633  ;;  %2512 = vmatprep.subr.msk.mxu1 %vm847_vm0, %v4510_v14  ;;  %v632_v56 = vpop.permute.xlu0 %631 }
 0x10b   : > { %v3645_v33 = vadd.f32 %v632_v56, %v601_v43  ;;  %v3654_v57 = vadd.f32 %v3553_v58, %v602_v60  ;;  %v4526_v58 = vld [vmem:[#allocation8_spill] sm:$0xff]  ;;  %v4543_v56 = vld [vmem:[#allocation35_spill] sm:$0xff]  ;;  %v4544_v43 = vld [vmem:[#allocation34_spill] sm:$0xff] }
 0x10c   : > { %1173 = vperm.xlu1 %2622, %v501_v28   ;;  %v328_v28 = vld [vmem:[%s2983_s16] sm:$0xff]  ;;  %s2135_s16 = scalar_lea.sflag [#allocation3], %s271_s30 }
 0x10d   : > { %1096 = vxpose.xlu0.b32.cont [8/16] (narrow) %v3557_v61, 8  ;;  %2513 = vmatpush3.xpose.msk.msra.mxu1 %vm847_vm0, %v4510_v14  ;;  %v4531_v14 = vld [vmem:[#allocation18_spill] sm:$0xff]  ;;  %v3713_v44 = vmul.f32 %v328_v28, %v328_v28  ;;  %v4545_v60 = vld [vmem:[#allocation33_spill] sm:$0xff] }
 0x10e   : > { %v3570_v59 = vpop.permute.xlu1 %701  ;;  %2514 = vmatprep.subr.msk.mxu1 %vm847_vm0, %v3594_v42 }
 0x110   : > { %1178 = vperm.xlu1 %2622, %v502_v4  }
 0x111   : > { %1097 = vxpose.xlu0.b32.cont [9/16] (narrow) %v3574_v26, 8  ;;  %2515 = vmatpush3.xpose.msk.msra.mxu1 %vm847_vm0, %v3594_v42 }
 0x112   : > { %v3584_v12 = vpop.permute.xlu1 %705  ;;  %2516 = vmatprep.subr.msk.mxu1 %vm847_vm0, %v4513_v50 }
 0x114   : > { %1183 = vperm.xlu1 %2622, %v503_v6   ;;  %v4530_v6 = vld [vmem:[#allocation14_spill] sm:$0xff] }
 0x115   : > { %1098 = vxpose.xlu0.b32.cont [10/16] (narrow) %v3588_v11, 8  ;;  %2517 = vmatpush3.xpose.msk.msra.mxu1 %vm847_vm0, %v4513_v50  ;;  %v4535_v50 = vld [vmem:[#allocation26_spill] sm:$0xff] }
 0x116   : > { %v3598_v10 = vpop.permute.xlu1 %709  ;;  %2518 = vmatprep.subr.msk.mxu1 %vm847_vm0, %v330_v55 }
 0x119   : > { %1099 = vxpose.xlu0.b32.cont [11/16] (narrow) %v3602_v23, 8  ;;  %2519 = vmatpush3.xpose.msk.msra.mxu1 %vm847_vm0, %v330_v55 }
 0x11a   : > { %v3609_v31 = vpop.permute.xlu1 %713  ;;  %2520 = vmatprep.subr.msk.mxu1 %vm847_vm0, %v4517_v45 }
 0x11d   : > { %1100 = vxpose.xlu0.b32.cont [12/16] (narrow) %v3613_v17, 8  ;;  %2521 = vmatpush3.xpose.msk.msra.mxu1 %vm847_vm0, %v4517_v45 }
 0x11e   : > { %v3621_v40 = vpop.permute.xlu1 %717  ;;  %2522 = vmatprep.subr.msk.mxu1 %vm847_vm0, %v328_v28 }
 0x121   : > { %1101 = vxpose.xlu0.b32.cont [13/16] (narrow) %v3624_v34, 8  ;;  %2523 = vmatpush3.xpose.msk.msra.mxu1 %vm847_vm0, %v328_v28  ;;  %v4548_v28 = vld [vmem:[#allocation31_spill] sm:$0xff] }
 0x122   : > { %v3630_v2 = vpop.permute.xlu1 %721 }
 0x124   : > { %2525 = vmatmul.mubr.msk.f32.vlgmr.msra.gmra.mxu1 %vm847_vm0, %v4522_v62  ;;  %v3723_v62 = vmul.f32 %v330_v55, %v330_v55 }
 0x125   : > { %1102 = vxpose.xlu0.b32.cont [14/16] (narrow) %v3634_v53, 8  ;;  %2527 = vmatprep.mubr.msk.f32.mxu1 %vm847_vm0, %v4523_v39  ;;  %v2470_v39 = vpop.f32.mrf.mxu0 }
 0x126   : > { %v3642_v27 = vpop.permute.xlu1 %725 }
 0x127   : > { %4519 = vst [vmem:[#allocation42_spill] sm:$0xff] %v3642_v27  ;;  %v1010_v55 = vpop.f32.mrf.mxu0 }
 0x128   : > { %2528 = vmatmul.mubr.msk.f32.gmra.mxu1 %vm847_vm0, %v4524_v9  ;;  %v4546_v9 = vmov 0  }
 0x129   : > { %1103 = vxpose.xlu0.b32.cont [15/16] (narrow) %v3645_v33, 8  ;;  %2530 = vmatprep.mubr.msk.f32.mxu1 %vm847_vm0, %v4525_v48  ;;  %v4547_v48 = vld [vmem:[#allocation32_spill] sm:$0xff] }
 0x12a   : > { %v3651_v63 = vpop.permute.xlu1 %729 }
 0x12b   : > { %4521 = vst [vmem:[#allocation71_spill] sm:$0xff] %v3651_v63 }
 0x12c   : > { %2531 = vmatmul.mubr.msk.f32.gmra.mxu1 %vm847_vm0, %v4526_v58  ;;  %v3734_v58 = vmul.f32 %v3594_v42, %v3594_v42  ;;  %v2473_v42 = vpop.f32.mrf.mxu0 }
 0x12d   : > { %1104 = vxpose.xlu0.b32.end [16/16] (narrow) %v3654_v57, 8  ;;  %2533 = vmatprep.mubr.msk.f32.mxu1 %vm847_vm0, %v4527_v7 }
 0x12e   : > { %v3661_v4 = vpop.permute.xlu1 %765 }
 0x130   : > { %2534 = vmatmul.mubr.msk.f32.gmra.mxu1 %vm847_vm0, %v4528_v15  ;;  %v4549_v15 = vld [vmem:[#allocation30_spill] sm:$0xff] }
 0x131   : > { %2536 = vmatprep.mubr.msk.f32.mxu1 %vm847_vm0, %v4529_v3  ;;  %v4550_v3 = vld [vmem:[#allocation29_spill] sm:$0xff] }
 0x132   : > { %v3667_v0 = vpop.permute.xlu1 %769 }
 0x134   : > { %2537 = vmatmul.mubr.msk.f32.gmra.mxu1 %vm847_vm0, %v4530_v6  ;;  %v3746_v6 = vmul.f32 %v3565_v1, %v3565_v1  ;;  %v1020_v1 = vpop.f32.mrf.mxu0 }
 0x135   : > { %2539 = vmatprep.mubr.msk.f32.mxu1 %vm847_vm0, %v4531_v14 }
 0x136   : > { %v3673_v8 = vpop.permute.xlu1 %773 }
 0x138   : > { %2540 = vmatmul.mubr.msk.f32.gmra.mxu1 %vm847_vm0, %v4532_v30  ;;  %v4552_v30 = vld [vmem:[#allocation24_spill] sm:$0xff] }
 0x139   : > { %2542 = vmatprep.mubr.msk.f32.mxu1 %vm847_vm0, %v4533_v35  ;;  %v4553_v35 = vld [vmem:[#allocation19_spill] sm:$0xff] }
 0x13a   : > { %v3679_v47 = vpop.permute.xlu1 %777 }
 0x13c   : > { %2543 = vmatmul.mubr.msk.f32.gmra.mxu1 %vm847_vm0, %v4534_v5  ;;  %v3758_v5 = vmul.f32 %v3536_v54, %v3536_v54 }
 0x13d   : > { %2545 = vmatprep.mubr.msk.f32.mxu1 %vm847_vm0, %v4535_v50  ;;  %v4414_v50 = vlaneseq }
 0x13e   : > { %v3685_v24 = vpop.permute.xlu1 %781 }
 0x13f   : > { %v3773_v54 = vshrl.u32 %v4414_v50, 7 }
 0x140   : > { %2546 = vmatmul.mubr.msk.f32.gmra.mxu1 %vm847_vm0, %v4536_v41 }
 0x141   : > { %2548 = vmatprep.mubr.msk.f32.mxu1 %vm847_vm0, %v4537_v20  ;;  %v4555_v20 = vld [vmem:[#allocation16_spill] sm:$0xff]  ;;  %4557 = vst [vmem:[#allocation70_spill] sm:$0xff] %v3773_v54 }
 0x142   : > { %v3693_v13 = vpop.permute.xlu1 %785 }
 0x144   : > { %2549 = vmatmul.mubr.msk.f32.gmra.mxu1 %vm847_vm0, %v4539_v18  ;;  %v4556_v18 = vld [vmem:[#allocation13_spill] sm:$0xff] }
 0x145   : > { %2551 = vmatprep.mubr.msk.f32.mxu1 %vm847_vm0, %v4540_v36  ;;  %v3770_v36 = vmul.f32 %v3509_v46, %v3509_v46 }
 0x146   : > { %v3701_v51 = vpop.permute.xlu1 %789 }
 0x147   : > { %4538 = vst [vmem:[#allocation64_spill] sm:$0xff] %v3701_v51 }
 0x148   : > { %2552 = vmatmul.mubr.msk.f32.gmra.mxu1 %vm847_vm0, %v4541_v22 }
 0x149   : > { %2554 = vmatprep.mubr.msk.f32.mxu1 %vm847_vm0, %v4543_v56  ;;  %v2476_v56 = vpop.f32.mrf.mxu0 }
 0x14a   : > { %v3709_v45 = vpop.permute.xlu1 %793 }
 0x14b   : > { %4542 = vst [vmem:[#allocation23_spill] sm:$0xff] %v3709_v45 }
 0x14c   : > { %2555 = vmatmul.mubr.msk.f32.gmra.mxu1 %vm847_vm0, %v4544_v43  ;;  %v4559_v43 = vld [vmem:[#allocation12_spill] sm:$0xff] }
 0x14d   : > { %2557 = vmatprep.mubr.msk.f32.mxu1 %vm847_vm0, %v4545_v60  ;;  %v3782_v60 = vsub.s32 0, %v3773_v54  ;;  %v1222_v54 = vmul.f32 2.0, %v2470_v39 }
 0x14e   : > { %v3717_v37 = vpop.permute.xlu1 %833 }
 0x14f   : > { %4560 = vst [vmem:[#allocation53_spill] sm:$0xff] %v3782_v60 }
 0x150   : > { %2558 = vmatmul.mubr.msk.f32.gmra.mxu1 %vm847_vm0, %v4547_v48  ;;  %v1030_v48 = vpop.f32.mrf.mxu0 }
 0x151   : > { %2560 = vmatprep.mubr.msk.f32.mxu1 %vm847_vm0, %v4548_v28 }
 0x152   : > { %v3736_v7 = vpop.permute.xlu1 %841 }
 0x154   : > { %2561 = vmatmul.mubr.msk.f32.gmra.mxu1 %vm847_vm0, %v4549_v15 }
 0x155   : > { %2563 = vmatprep.mubr.msk.f32.mxu1 %vm847_vm0, %v4550_v3  ;;  %v1225_v3 = vmul.f32 2.0, %v1030_v48 }
 0x156   : > { %699 = vrot.lane.b32.xlu0 %v3713_v44, %s2702_s10 }
 0x157   : > { %2623 = vset.pattern.permute.xlu0 %v4546_v9  ;;  %v3786_v9 = vmul.f32 %v3483_v32, %v3483_v32  ;;  %v2479_v32 = vpop.f32.mrf.mxu0 }
 0x158   : > { %2564 = vmatmul.mubr.msk.f32.gmra.mxu1 %vm847_vm0, %v4552_v30  ;;  %v3797_v30 = vmul.f32 %v3464_v29, %v3464_v29  ;;  %v1226_v29 = vmul.f32 2.0, %v2476_v56 }
 0x159   : > { %2566 = vmatprep.mubr.msk.f32.mxu1 %vm847_vm0, %v4553_v35  ;;  %v1221_v35 = vmul.f32 2.0, %v1010_v55 }
 0x15a   : > { %703 = vrot.lane.b32.xlu0 %v3723_v62, %s2702_s10 }
 0x15c   : > { %2567 = vmatmul.mubr.msk.f32.gmra.mxu1 %vm847_vm0, %v4555_v20 }
 0x15d   : > { %2569 = vmatprep.mubr.msk.f32.mxu1 %vm847_vm0, %v4556_v18  ;;  %v1223_v18 = vmul.f32 2.0, %v1020_v1  ;;  %v1224_v1 = vmul.f32 2.0, %v2473_v42 }
 0x15e   : > { %707 = vrot.lane.b32.xlu0 %v3734_v58, %s2702_s10 }
 0x15f   : > { %v3748_v14 = vpop.permute.xlu1 %1123 }
 0x160   : > { %4551 = vst [vmem:[#allocation57_spill] sm:$0xff] %v3748_v14  ;;  %2570 = vmatmul.mubr.msk.f32.gmra.mxu1 %vm847_vm0, %v4559_v43 }
 0x162   : > { %711 = vrot.lane.b32.xlu0 %v3746_v6, %s2702_s10 }
 0x163   : > { %v3760_v41 = vpop.permute.xlu1 %1128 }
 0x164   : > { %4554 = vst [vmem:[#allocation41_spill] sm:$0xff] %v3760_v41 }
 0x166   : > { %715 = vrot.lane.b32.xlu0 %v3758_v5, %s2702_s10 }
 0x167   : > { %v3775_v22 = vpop.permute.xlu1 %1133 }
 0x168   : > { %4558 = vst [vmem:[#allocation66_spill] sm:$0xff] %v3775_v22 }
 0x16a   : > { %719 = vrot.lane.b32.xlu0 %v3770_v36, %s2702_s10 }
 0x16b   : > { %v3788_v46 = vpop.permute.xlu1 %1138 }
 0x16c   : > { %4561 = vst [vmem:[#allocation44_spill] sm:$0xff] %v3788_v46 }
 0x16d   : > { %v1105_v28 = vpop.trf.xlu0 }
 0x16e   : > { %v3791_v15 = vrot.slane %v1105_v28, %v3782_v60  ;;  %723 = vrot.lane.b32.xlu0 %v3786_v9, %s2702_s10 }
 0x16f   : > { %v3799_v20 = vpop.permute.xlu1 %1143 }
 0x170   : > { %4562 = vst [vmem:[#allocation43_spill] sm:$0xff] %v3799_v20  ;;  %v1209_v43 = vadd.f32 %v3791_v15, %v3799_v20  ;;  %v1205_v28 = vadd.f32 %v3791_v15, %v3748_v14  ;;  %v1207_v50 = vadd.f32 %v3791_v15, %v3775_v22  ;;  %v1206_v48 = vadd.f32 %v3791_v15, %v3760_v41  ;;  %v1040_v20 = vpop.f32.mrf.mxu0 }
 0x171   : > { %v1208_v14 = vadd.f32 %v3791_v15, %v3788_v46 }
 0x172   : > { %v1241_v60 = vsub.f32 %v1209_v43, %v1225_v3  ;;  %727 = vrot.lane.b32.xlu0 %v3797_v30, %s2702_s10  ;;  %v1237_v55 = vsub.f32 %v1205_v28, %v1221_v35  ;;  %v1239_v51 = vsub.f32 %v1207_v50, %v1223_v18  ;;  %v1238_v41 = vsub.f32 %v1206_v48, %v1222_v54  ;;  %v2482_v35 = vpop.f32.mrf.mxu0 }
 0x173   : > { %v3811_v45 = vpop.permute.xlu1 %1148  ;;  %v1227_v3 = vmul.f32 2.0, %v1040_v20  ;;  %v1240_v43 = vsub.f32 %v1208_v14, %v1224_v1  ;;  %v1228_v50 = vmul.f32 2.0, %v2479_v32 }
 0x174   : > { %4563 = vst [vmem:[#allocation51_spill] sm:$0xff] %v3811_v45  ;;  %v1210_v22 = vadd.f32 %v3791_v15, %v3811_v45  ;;  %v1253_v63 = vmax.f32 %v1237_v55, 0.0  ;;  %v1257_v39 = vmax.f32 %v1241_v60, 0.0  ;;  %v1255_v27 = vmax.f32 %v1239_v51, 0.0  ;;  %v1050_v20 = vpop.f32.mrf.mxu0 }
 0x175   : > { %v3823_v55 = vmax.f32 %v1238_v41, 0.0  ;;  %v1256_v14 = vmax.f32 %v1240_v43, 0.0  ;;  %v1229_v41 = vmul.f32 2.0, %v1050_v20 }
 0x176   : > { %v1242_v56 = vsub.f32 %v1210_v22, %v1226_v29  ;;  %763 = vrot.lane.b32.xlu0 %v3713_v44, %s2703_s17  ;;  %1269 = vmin.xlane.f32.xlu1 %v1253_v63  ;;  %v1322_v28 = vmin.f32 %v1253_v63, %v1257_v39  ;;  %v2485_v48 = vpop.f32.mrf.mxu0 }
 0x177   : > { %v3819_v42 = vpop.permute.xlu1 %1153 }
 0x178   : > { %4564 = vst [vmem:[#allocation46_spill] sm:$0xff] %v3819_v42  ;;  %v1211_v46 = vadd.f32 %v3791_v15, %v3819_v42  ;;  %v1258_v45 = vmax.f32 %v1242_v56, 0.0  ;;  %v1230_v56 = vmul.f32 2.0, %v2482_v35 }
 0x17a   : > { %v1243_v54 = vsub.f32 %v1211_v46, %v1227_v3  ;;  %767 = vrot.lane.b32.xlu0 %v3723_v62, %s2703_s17  ;;  %1273 = vmin.xlane.f32.xlu1 %v1255_v27  ;;  %v1323_v22 = vmin.f32 %v3823_v55, %v1258_v45 }
 0x17b   : > { %v3828_v60 = vpop.permute.xlu1 %1158 }
 0x17c   : > { %4565 = vst [vmem:[#allocation45_spill] sm:$0xff] %v3828_v60  ;;  %v1212_v63 = vadd.f32 %v3791_v15, %v3828_v60  ;;  %v1259_v18 = vmax.f32 %v1243_v54, 0.0  ;;  %v1060_v54 = vpop.f32.mrf.mxu0 }
 0x17e   : > { %v1244_v51 = vsub.f32 %v1212_v63, %v1228_v50  ;;  %771 = vrot.lane.b32.xlu0 %v3734_v58, %s2703_s17  ;;  %1275 = vmin.xlane.f32.xlu1 %v1256_v14  ;;  %v1324_v46 = vmin.f32 %v1255_v27, %v1259_v18 }
 0x17f   : > { %v3834_v32 = vpop.permute.xlu1 %1163 }
 0x180   : > { %4566 = vst [vmem:[#allocation72_spill] sm:$0xff] %v3834_v32  ;;  %v1213_v29 = vadd.f32 %v3791_v15, %v3834_v32  ;;  %v1260_v1 = vmax.f32 %v1244_v51, 0.0  ;;  %v1231_v51 = vmul.f32 2.0, %v1060_v54  ;;  %v1232_v32 = vmul.f32 2.0, %v2485_v48 }
 0x182   : > { %v1245_v3 = vsub.f32 %v1213_v29, %v1229_v41  ;;  %775 = vrot.lane.b32.xlu0 %v3746_v6, %s2703_s17  ;;  %1277 = vmin.xlane.f32.xlu1 %v1257_v39  ;;  %v1325_v43 = vmin.f32 %v1256_v14, %v1260_v1  ;;  %v3850_v29 = vpop.f32.mrf.mxu0 }
 0x183   : > { %v3840_v50 = vpop.permute.xlu1 %1168 }
 0x184   : > { %4567 = vst [vmem:[#allocation49_spill] sm:$0xff] %v3840_v50  ;;  %v1214_v27 = vadd.f32 %v3791_v15, %v3840_v50  ;;  %v1261_v20 = vmax.f32 %v1245_v3, 0.0  ;;  %v4580_v50 = vld [vmem:[#allocation67_spill] sm:$0xff] }
 0x186   : > { %v1246_v63 = vsub.f32 %v1214_v27, %v1230_v56  ;;  %779 = vrot.lane.b32.xlu0 %v3758_v5, %s2703_s17  ;;  %1279 = vmin.xlane.f32.xlu1 %v1258_v45  ;;  %v3846_v35 = vmin.f32 %v1322_v28, %v1261_v20  ;;  %v1070_v28 = vpop.f32.mrf.mxu0 }
 0x187   : > { %v3848_v41 = vpop.permute.xlu1 %1173  ;;  %v1233_v48 = vmul.f32 2.0, %v1070_v28  ;;  %v4573_v28 = vld [vmem:[#allocation56_spill] sm:$0xff] }
 0x188   : > { %4568 = vst [vmem:[#allocation48_spill] sm:$0xff] %v3848_v41  ;;  %v1215_v39 = vadd.f32 %v3791_v15, %v3848_v41  ;;  %v1262_v14 = vmax.f32 %v1246_v63, 0.0  ;;  %v4579_v41 = vld [vmem:[#allocation59_spill] sm:$0xff] }
 0x18a   : > { %v1247_v60 = vsub.f32 %v1215_v39, %v1231_v51  ;;  %783 = vrot.lane.b32.xlu0 %v3770_v36, %s2703_s17  ;;  %1281 = vmin.xlane.f32.xlu1 %v1259_v18  ;;  %v3856_v56 = vmin.f32 %v1323_v22, %v1262_v14 }
 0x18b   : > { %v3858_v45 = vpop.permute.xlu1 %1178 }
 0x18c   : > { %4569 = vst [vmem:[#allocation47_spill] sm:$0xff] %v3858_v45  ;;  %v1216_v3 = vadd.f32 %v3791_v15, %v3858_v45  ;;  %v1263_v54 = vmax.f32 %v1247_v60, 0.0  ;;  %v4571_v60 = vld [vmem:[#allocation40_spill] sm:$0xff]  ;;  %v4578_v45 = vld [vmem:[#allocation27_spill] sm:$0xff] }
 0x18e   : > { %v1248_v27 = vsub.f32 %v1216_v3, %v1232_v32  ;;  %787 = vrot.lane.b32.xlu0 %v3786_v9, %s2703_s17  ;;  %1283 = vmin.xlane.f32.xlu1 %v1260_v1  ;;  %v3864_v63 = vmin.f32 %v1324_v46, %v1263_v54  ;;  %v3874_v32 = vmul.f32 %v4571_v60, %v4571_v60 }
 0x18f   : > { %v3866_v51 = vpop.permute.xlu1 %1183  ;;  %v442_v46 = vadd.f32 %v4579_v41, %v4578_v45 }
 0x190   : > { %4570 = vst [vmem:[#allocation7_spill] sm:$0xff] %v3866_v51  ;;  %v1217_v22 = vadd.f32 %v3791_v15, %v3866_v51  ;;  %v1264_v18 = vmax.f32 %v1248_v27, 0.0  ;;  %v4577_v51 = vld [vmem:[#allocation68_spill] sm:$0xff] }
 0x191   : > { %v506_v42 = vadd.f32 %v4580_v50, %v442_v46 }
 0x192   : > { %v1249_v39 = vsub.f32 %v1217_v22, %v1233_v48  ;;  %791 = vrot.lane.b32.xlu0 %v3797_v30, %s2703_s17  ;;  %1285 = vmin.xlane.f32.xlu1 %v1261_v20  ;;  %v3876_v3 = vmin.f32 %v1325_v43, %v1264_v18  ;;  %v4572_v20 = vld [vmem:[#allocation22_spill] sm:$0xff]  ;;  %v4574_v43 = vld [vmem:[#allocation65_spill] sm:$0xff]  ;;  %v4575_v22 = vld [vmem:[#allocation28_spill] sm:$0xff] }
 0x193   : > { %v440_v27 = vadd.f32 %v4573_v28, %v4572_v20 }
 0x194   : > { %v3878_v1 = vmax.f32 %v1249_v39, 0.0  ;;  %v4576_v39 = vld [vmem:[#allocation60_spill] sm:$0xff] }
 0x195   : > { %v504_v48 = vadd.f32 %v4574_v43, %v440_v27  ;;  %v441_v60 = vadd.f32 %v4576_v39, %v4575_v22 }
 0x196   : > { %831 = vrot.lane.b32.xlu0 %v3874_v32, %s2702_s10  ;;  %1287 = vmin.xlane.f32.xlu1 %v1262_v14  ;;  %s2345_s10 = sshll.u32 %s2757_s22, 4  ;;  %s2705_s22 = smov [#allocation2]  }
 0x197   : > { %v505_v14 = vadd.f32 %v4577_v51, %v441_v60  ;;  %s4312_s15 = scalar_lea.hbm %s4353_s5, %s2345_s10  ;;  %s2644_s23 = sshll.u32 %s2705_s22, 4  ;;  %s2645_s23 = int_to_ptr.vmem [resolvable:$false] %s2644_s23 }
 0x198   : > { %s2646_s25 = scalar_lea.vmem %s2645_s23, 32  ;;  %p2647_p0 = scmp.lt.s32.totalorder %s2148_s12, %s2645_s23 }
 0x19a   : > { %839 = vrot.lane.b32.xlu0 %v3874_v32, %s2703_s17  ;;  %1289 = vmin.xlane.f32.xlu1 %v1263_v54  ;;  %s2640_s17 = scalar_lea.vmem %s2148_s12, 16 }
 0x19b   : > { %p2641_p11 = scmp.ne.s32.totalorder %s2148_s12, %s2640_s17  ;;  %p2648_p1 = scmp.lt.s32.totalorder %s2646_s25, %s2640_s17 }
 0x19d   : > { %p2642_p12 = pnand %p2641_p11, %p2774_p5  ;;  %p2649_p2 = por %p2648_p1, %p2647_p0 }
 0x19e   : > { %1293 = vmin.xlane.f32.xlu1 %v3878_v1 }
 0x19f   : > { %p2643_p13 = pneg %p2642_p12 }
 0x1a1   : > { %p2650_p3 = pnand %p2649_p2, %p2643_p13 }
 0x1af   : > { %1188 = vperm.xlu1 %2622, %v504_v48  }
 0x1b3   : > { %1193 = vperm.xlu1 %2622, %v505_v14  }
 0x1b7   : > { %1198 = vperm.xlu1 %2622, %v506_v42  }
 0x1b9   : > { %1271 = vmin.xlane.f32.xlu0 %v3823_v55 }
 0x1bb   : > { %1653 = vperm.xlu1 %2622, %v3461_v38  }
 0x1bd   : > { %1291 = vmin.xlane.f32.xlu0 %v1264_v18 }
 0x1bf   : > { %1663 = vperm.xlu1 %2622, %v3490_v49  }
 0x1c3   : > { %1668 = vperm.xlu1 %2622, %v3501_v25  }
 0x1c7   : > { %1673 = vperm.xlu1 %2622, %v3516_v16  }
 0x1c8   : > { %v700_v54 = vpop.permute.xlu0 %699 }
 0x1cb   : > { %1678 = vperm.xlu1 %2622, %v3528_v52   ;;  %v747_v52 = vadd.f32 %v700_v54, %v3713_v44 }
 0x1cc   : > { %v704_v51 = vpop.permute.xlu0 %703 }
 0x1cf   : > { %1683 = vperm.xlu1 %2622, %v3543_v21  }
 0x1d0   : > { %v708_v41 = vpop.permute.xlu0 %707 }
 0x1d1   : > { %v751_v50 = vadd.f32 %v708_v41, %v3734_v58 }
 0x1d3   : > { %1688 = vperm.xlu1 %2622, %v3557_v61   ;;  %v749_v61 = vadd.f32 %v704_v51, %v3723_v62 }
 0x1d4   : > { %v712_v42 = vpop.permute.xlu0 %711 }
 0x1d7   : > { %1693 = vperm.xlu1 %2622, %v3574_v26  }
 0x1d8   : > { %v716_v38 = vpop.permute.xlu0 %715 }
 0x1d9   : > { %v755_v44 = vadd.f32 %v716_v38, %v3758_v5 }
 0x1db   : > { %1698 = vperm.xlu1 %2622, %v3588_v11  }
 0x1dc   : > { %v720_v49 = vpop.permute.xlu0 %719 }
 0x1dd   : > { %v757_v62 = vadd.f32 %v720_v49, %v3770_v36 }
 0x1df   : > { %1708 = vperm.xlu1 %2622, %v3613_v17   ;;  %v753_v17 = vadd.f32 %v712_v42, %v3746_v6  ;;  %v4581_v42 = vld [vmem:[#allocation69_spill] sm:$0xff] }
 0x1e0   : > { %v724_v25 = vpop.permute.xlu0 %723 }
 0x1e1   : > { %v759_v58 = vadd.f32 %v724_v25, %v3786_v9  ;;  %v838_v9 = vadd.f32 %v3717_v37, %v4581_v42 }
 0x1e3   : > { %1718 = vperm.xlu1 %2622, %v3634_v53  }
 0x1e4   : > { %v728_v16 = vpop.permute.xlu0 %727 }
 0x1e5   : > { %v761_v6 = vadd.f32 %v728_v16, %v3797_v30  ;;  %v846_v30 = vadd.f32 %v3736_v7, %v838_v9 }
 0x1e7   : > { %1728 = vperm.xlu1 %2622, %v3654_v57  }
 0x1e8   : > { %v764_v21 = vpop.permute.xlu0 %763 }
 0x1e9   : > { %v3911_v55 = vadd.f32 %v764_v21, %v747_v52 }
 0x1ec   : > { %v768_v26 = vpop.permute.xlu0 %767 }
 0x1ed   : > { %v3914_v11 = vadd.f32 %v768_v26, %v749_v61 }
 0x1f0   : > { %v772_v45 = vpop.permute.xlu0 %771 }
 0x1f1   : > { %v3917_v18 = vadd.f32 %v772_v45, %v751_v50  ;;  %v2491_v50 = vpop.f32.mrf.mxu0 }
 0x1f4   : > { %v776_v53 = vpop.permute.xlu0 %775 }
 0x1f5   : > { %v3920_v46 = vadd.f32 %v776_v53, %v753_v17  ;;  %v1234_v17 = vmul.f32 2.0, %v3850_v29  ;;  %v4582_v29 = vmin.f32 %v3846_v35, %v3878_v1 }
 0x1f8   : > { %v780_v57 = vpop.permute.xlu0 %779 }
 0x1f9   : > { %v3923_v20 = vadd.f32 %v780_v57, %v755_v44 }
 0x1fc   : > { %v784_v28 = vpop.permute.xlu0 %783 }
 0x1fd   : > { %v3926_v27 = vadd.f32 %v784_v28, %v757_v62  ;;  %v1236_v28 = vmul.f32 2.0, %v2491_v50 }
 0x1ff   : > { %v1270_v43 = vpop.xlane.xlu1 %1269 }
 0x200   : > { %v788_v48 = vpop.permute.xlu0 %787 }
 0x201   : > { %v3929_v22 = vadd.f32 %v788_v48, %v759_v58 }
 0x203   : > { %v1274_v39 = vpop.xlane.xlu1 %1273 }
 0x204   : > { %v792_v5 = vpop.permute.xlu0 %791 }
 0x205   : > { %v3931_v60 = vadd.f32 %v792_v5, %v761_v6 }
 0x207   : > { %v1276_v14 = vpop.xlane.xlu1 %1275 }
 0x208   : > { %v832_v54 = vpop.permute.xlu0 %831 }
 0x209   : > { %v837_v36 = vadd.f32 %v832_v54, %v3874_v32  ;;  %v1080_v32 = vpop.f32.mrf.mxu0 }
 0x20a   : > { %v1235_v44 = vmul.f32 2.0, %v1080_v32 }
 0x20b   : > { %v1278_v51 = vpop.xlane.xlu1 %1277 }
 0x20c   : > { %v840_v41 = vpop.permute.xlu0 %839 }
 0x20d   : > { %v845_v38 = vadd.f32 %v840_v41, %v837_v36 }
 0x20f   : > { %v1280_v49 = vpop.xlane.xlu1 %1279  ;;  %2062 = vperm.xlu1 %2622, %v845_v38  }
 0x213   : > { %v1282_v25 = vpop.xlane.xlu1 %1281  ;;  %2067 = vperm.xlu1 %2622, %v846_v30  }
 0x217   : > { %v1284_v16 = vpop.xlane.xlu1 %1283 }
 0x21b   : > { %v1286_v52 = vpop.xlane.xlu1 %1285 }
 0x21f   : > { %v1288_v21 = vpop.xlane.xlu1 %1287 }
 0x223   : > { %v1290_v61 = vpop.xlane.xlu1 %1289 }
 0x227   : > { %v1294_v26 = vpop.xlane.xlu1 %1293 }
 0x22b   : > { %v3937_v45 = vpop.permute.xlu1 %1188 }
 0x22c   : > { %v1218_v37 = vadd.f32 %v3791_v15, %v3937_v45 }
 0x22e   : > { %v1250_v53 = vsub.f32 %v1218_v37, %v1234_v17 }
 0x22f   : > { %v3942_v57 = vpop.permute.xlu1 %1193 }
 0x230   : > { %v1219_v7 = vadd.f32 %v3791_v15, %v3942_v57  ;;  %v1266_v62 = vmax.f32 %v1250_v53, 0.0 }
 0x232   : > { %v1251_v58 = vsub.f32 %v1219_v7, %v1235_v44  ;;  %1295 = vmin.xlane.f32.xlu0 %v1266_v62  ;;  %v1331_v48 = vmin.f32 %v3856_v56, %v1266_v62 }
 0x233   : > { %v3947_v6 = vpop.permute.xlu1 %1198 }
 0x234   : > { %v1334_v5 = vmin.f32 %v4582_v29, %v1331_v48  ;;  %v1220_v54 = vadd.f32 %v3791_v15, %v3947_v6  ;;  %v1267_v36 = vmax.f32 %v1251_v58, 0.0 }
 0x236   : > { %v1252_v41 = vsub.f32 %v1220_v54, %v1236_v28  ;;  %v1332_v42 = vmin.f32 %v3864_v63, %v1267_v36 }
 0x238   : > { %v3955_v9 = vmax.f32 %v1252_v41, 0.0 }
 0x23a   : > { %v1333_v50 = vmin.f32 %v3876_v3, %v3955_v9 }
 0x23c   : > { %2028 = vxpose.xlu1.b32.start [1/2] (short) (narrow) %v845_v38, 8  ;;  %v1335_v56 = vmin.f32 %v1332_v42, %v1333_v50  ;;  %v4588_v42 = vld [vmem:[#allocation61_spill] sm:$0xff] }
 0x23d   : > { %v758_v50 = vadd.f32 %v3630_v2, %v4588_v42 }
 0x23e   : > { %v3959_v32 = vmin.f32 %v1334_v5, %v1335_v56 }
 0x240   : > { %2029 = vxpose.xlu1.b32.end [2/2] (short) (narrow) %v846_v30, 8 }
 0x242   : > { %v1272_v17 = vpop.xlane.xlu0 %1271 }
 0x243   : > { %v1301_v35 = vadd.f32 %v1272_v17, %v1270_v43 }
 0x245   : > { %v1302_v1 = vadd.f32 %v1301_v35, %v1274_v39  ;;  %v3967_v39 = vpop.permute.xlu1 %1653  ;;  %v4590_v35 = vld [vmem:[#allocation42_spill] sm:$0xff] }
 0x246   : > { %v1292_v30 = vpop.xlane.xlu0 %1291 }
 0x247   : > { %v1303_v37 = vadd.f32 %v1302_v1, %v1276_v14  ;;  %v4583_v14 = vld [vmem:[#allocation50_spill] sm:$0xff] }
 0x248   : > { %1658 = vperm.xlu0 %2623, %v3476_v19  }
 0x249   : > { %v1304_v15 = vadd.f32 %v1303_v37, %v1278_v51  ;;  %v3969_v19 = vpop.permute.xlu1 %1663 }
 0x24b   : > { %v1305_v53 = vadd.f32 %v1304_v15, %v1280_v49  ;;  %v4591_v15 = vld [vmem:[#allocation64_spill] sm:$0xff] }
 0x24c   : > { %1703 = vperm.xlu0 %2623, %v3602_v23   ;;  %v748_v23 = vadd.f32 %v3570_v59, %v4583_v14  ;;  %v2578_v14 = vpop.f32.mrf.mxu0 }
 0x24d   : > { %v1306_v63 = vadd.f32 %v1305_v53, %v1282_v25  ;;  %v4584_v25 = vld [vmem:[#allocation52_spill] sm:$0xff] }
 0x24e   : > { %v812_v51 = vadd.f32 %v3661_v4, %v748_v23 }
 0x24f   : > { %v1307_v44 = vadd.f32 %v1306_v63, %v1284_v16  ;;  %v750_v16 = vadd.f32 %v3584_v12, %v4584_v25  ;;  %v4593_v63 = vld [vmem:[#allocation71_spill] sm:$0xff]  ;;  %v2019_v25 = vpop.f32.mrf.mxu0 }
 0x250   : > { %1713 = vperm.xlu0 %2623, %v3624_v34   ;;  %v3974_v34 = vpop.f32.mrf.mxu1 }
 0x251   : > { %v1308_v3 = vadd.f32 %v1307_v44, %v1286_v52  ;;  %v814_v59 = vadd.f32 %v3667_v0, %v750_v16  ;;  %v4586_v0 = vld [vmem:[#allocation55_spill] sm:$0xff] }
 0x252   : > { %v3979_v49 = vpop.f32.mrf.mxu1  ;;  %v754_v48 = vadd.f32 %v3609_v31, %v4586_v0 }
 0x253   : > { %v1309_v38 = vadd.f32 %v1308_v3, %v1288_v21 }
 0x254   : > { %1723 = vperm.xlu0 %2623, %v3645_v33   ;;  %v3977_v33 = vpop.permute.xlu1 %1668  ;;  %v3986_v21 = vpop.f32.mrf.mxu1 }
 0x255   : > { %v1310_v7 = vadd.f32 %v1309_v38, %v1290_v61  ;;  %v4585_v61 = vld [vmem:[#allocation54_spill] sm:$0xff] }
 0x257   : > { %v1311_v62 = vadd.f32 %v1310_v7, %v1292_v30  ;;  %v4594_v7 = vld [vmem:[#allocation23_spill] sm:$0xff] }
 0x258   : > { %v3983_v52 = vpop.permute.xlu1 %1673 }
 0x259   : > { %v3965_v43 = vadd.f32 %v1311_v62, %v1294_v26  ;;  %v752_v26 = vadd.f32 %v3598_v10, %v4585_v61  ;;  %v818_v10 = vadd.f32 %v3679_v47, %v754_v48  ;;  %v2077_v61 = vmul.f32 2.0, %v2578_v14 }
 0x25b   : > { %v816_v12 = vadd.f32 %v3673_v8, %v752_v26  ;;  %v4587_v8 = vld [vmem:[#allocation58_spill] sm:$0xff]  ;;  %v4595_v26 = vld [vmem:[#allocation53_spill] sm:$0xff] }
 0x25c   : > { %v3991_v4 = vpop.permute.xlu1 %1678  ;;  %v756_v54 = vadd.f32 %v3621_v40, %v4587_v8  ;;  %v822_v40 = vadd.f32 %v3693_v13, %v758_v50  ;;  %v4592_v13 = vld [vmem:[#allocation63_spill] sm:$0xff] }
 0x25d   : > { %v762_v44 = vadd.f32 %v4593_v63, %v4592_v13  ;;  %v4598_v63 = vld [vmem:[#allocation70_spill] sm:$0xff] }
 0x25e   : > { %v820_v31 = vadd.f32 %v3685_v24, %v756_v54  ;;  %v4589_v24 = vld [vmem:[#allocation62_spill] sm:$0xff] }
 0x25f   : > { %v760_v1 = vadd.f32 %v4590_v35, %v4589_v24 }
 0x260   : > { %v3999_v58 = vpop.permute.xlu1 %1683 }
 0x261   : > { %v824_v2 = vadd.f32 %v4591_v15, %v760_v1 }
 0x264   : > { %v4009_v5 = vpop.permute.xlu1 %1688 }
 0x267   : > { %1297 = vmin.xlane.f32.xlu1 %v1267_v36 }
 0x268   : > { %v4015_v36 = vpop.permute.xlu1 %1693 }
 0x26c   : > { %v4023_v47 = vpop.permute.xlu1 %1698 }
 0x270   : > { %v4031_v17 = vpop.permute.xlu1 %1708 }
 0x272   : > { %1619 = vxpose.xlu0.b32.start [1/16] (narrow) %v3911_v55, 8  ;;  %v3989_v55 = vpop.f32.mrf.mxu1 }
 0x274   : > { %v3996_v28 = vpop.f32.mrf.mxu1  ;;  %v4041_v53 = vpop.permute.xlu1 %1718 }
 0x276   : > { %1620 = vxpose.xlu0.b32.cont [2/16] (narrow) %v812_v51, 8 }
 0x278   : > { %v4047_v3 = vpop.permute.xlu1 %1728 }
 0x27a   : > { %1621 = vxpose.xlu0.b32.cont [3/16] (narrow) %v3914_v11, 8  ;;  %v4001_v11 = vpop.f32.mrf.mxu1 }
 0x27c   : > { %v4006_v29 = vpop.f32.mrf.mxu1 }
 0x27e   : > { %1622 = vxpose.xlu0.b32.cont [4/16] (narrow) %v814_v59, 8 }
 0x282   : > { %1623 = vxpose.xlu0.b32.cont [5/16] (narrow) %v3917_v18, 8  ;;  %v4011_v18 = vpop.f32.mrf.mxu1 }
 0x284   : > { %v4018_v41 = vpop.f32.mrf.mxu1 }
 0x286   : > { %1624 = vxpose.xlu0.b32.cont [6/16] (narrow) %v816_v12, 8 }
 0x28a   : > { %1625 = vxpose.xlu0.b32.cont [7/16] (narrow) %v3920_v46, 8  ;;  %v4021_v46 = vpop.f32.mrf.mxu1  ;;  %v2063_v30 = vpop.permute.xlu1 %2062 }
 0x28c   : > { %v4028_v56 = vpop.f32.mrf.mxu1 }
 0x28e   : > { %1626 = vxpose.xlu0.b32.cont [8/16] (narrow) %v818_v10, 8  ;;  %v2068_v51 = vpop.permute.xlu1 %2067 }
 0x292   : > { %1627 = vxpose.xlu0.b32.cont [9/16] (narrow) %v3923_v20, 8  ;;  %v4033_v20 = vpop.f32.mrf.mxu1 }
 0x294   : > { %v4038_v37 = vpop.f32.mrf.mxu1 }
 0x296   : > { %1628 = vxpose.xlu0.b32.cont [10/16] (narrow) %v820_v31, 8 }
 0x29a   : > { %1629 = vxpose.xlu0.b32.cont [11/16] (narrow) %v3926_v27, 8  ;;  %v4043_v27 = vpop.f32.mrf.mxu1 }
 0x29c   : > { %v4050_v38 = vpop.f32.mrf.mxu1 }
 0x29e   : > { %1630 = vxpose.xlu0.b32.cont [12/16] (narrow) %v822_v40, 8  ;;  %v4053_v62 = vpop.f32.mrf.mxu1 }
 0x2a0   : > { %v4055_v23 = vpop.f32.mrf.mxu1 }
 0x2a2   : > { %1631 = vxpose.xlu0.b32.cont [13/16] (narrow) %v3929_v22, 8  ;;  %v826_v22 = vadd.f32 %v4594_v7, %v762_v44  ;;  %v4057_v16 = vpop.f32.mrf.mxu1  ;;  %v2098_v44 = vadd.s32 8, %v4598_v63 }
 0x2a4   : > { %v4060_v0 = vpop.f32.mrf.mxu1 }
 0x2a6   : > { %1632 = vxpose.xlu0.b32.cont [14/16] (narrow) %v824_v2, 8  ;;  %v4065_v50 = vpop.f32.mrf.mxu1  ;;  %v4597_v2 = vlaneseq }
 0x2a8   : > { %v4067_v35 = vpop.f32.mrf.mxu1  ;;  %v2100_v13 = vand.u32 127, %v4597_v2 }
 0x2aa   : > { %1633 = vxpose.xlu0.b32.cont [15/16] (narrow) %v3931_v60, 8  ;;  %v2076_v60 = vmul.f32 2.0, %v2019_v25  ;;  %v4069_v1 = vpop.f32.mrf.mxu1  ;;  %vm2101_vm1 = vcmp.eq.s32.totalorder %v4598_v63, %v2100_v13  ;;  %vm2102_vm3 = vcmp.eq.s32.totalorder %v2098_v44, %v2100_v13 }
 0x2ac   : > { %v4071_v15 = vpop.f32.mrf.mxu1 }
 0x2ae   : > { %1634 = vxpose.xlu0.b32.end [16/16] (narrow) %v826_v22, 8  ;;  %v4075_v7 = vpop.f32.mrf.mxu1  ;;  %v1337_v22 = vrot.slane %v3959_v32, 4 }
 0x2b8   : > { %v2044_v59 = vpop.trf.xlu1 }
 0x2b9   : > { %v2073_v12 = vrot.slane %v2044_v59, %v4595_v26 }
 0x2bb   : > { %v2074_v48 = vadd.f32 %v2073_v12, %v2063_v30  ;;  %v2075_v10 = vadd.f32 %v2073_v12, %v2068_v51  ;;  %v1296_v8 = vpop.xlane.xlu0 %1295 }
 0x2bc   : > { %v4063_v54 = vadd.f32 %v3965_v43, %v1296_v8 }
 0x2bd   : > { %v2079_v31 = vsub.f32 %v2075_v10, %v2077_v61  ;;  %v2078_v42 = vsub.f32 %v2074_v48, %v2076_v60  ;;  %v2562_v48 = vpop.f32.mrf.mxu1  ;;  %v1338_v10 = vmin.f32 %v3959_v32, %v1337_v22 }
 0x2be   : > { %4596 = vst [vmem:[#allocation5_spill] sm:$0xff] %v4063_v54 }
 0x2bf   : > { %v2081_v40 = vmax.f32 %v2079_v31, 0.0  ;;  %v2080_v24 = vmax.f32 %v2078_v42, 0.0  ;;  %v1339_v44 = vrot.slane %v1338_v10, 2 }
 0x2c1   : > { %2624 = vrsqrt.f32 %v2081_v40  ;;  %vm2091_vm2 = vcmp.eq.f32.partialorder %v2081_v40, inf  ;;  %v2094_v25 = vand.u32 2147483648, %v2081_v40  ;;  %vm2084_vm4 = vcmp.eq.f32.partialorder %v2080_v24, inf }
 0x2c2   : > { %2626 = vrsqrt.f32 %v2080_v24  ;;  %v2087_v59 = vand.u32 2147483648, %v2080_v24  ;;  %vm2093_vm5 = vcmp.eq.f32.partialorder %v2081_v40, 0.0  ;;  %vm2086_vm6 = vcmp.eq.f32.partialorder %v2080_v24, 0.0 }
 0x2ce   : > { %v2625_v43 = vpop.eup %2624 }
 0x2cf   : > { %v2627_v30 = vpop.eup %2626  ;;  %v2090_v14 = vmul.f32 %v2625_v43, %v2081_v40 }
 0x2d0   : > { %v2083_v51 = vmul.f32 %v2627_v30, %v2080_v24  ;;  %v1580_v30 = vpop.f32.mrf.mxu1 }
 0x2d1   : > { %v2092_v61 = vsel %vm2091_vm2, %v2081_v40, %v2090_v14  ;;  %v4082_v40 = vpop.permute.xlu0 %1658  ;;  %vm2129_vm2 = vcmask 15360  }
 0x2d2   : > { %v2085_v12 = vsel %vm2084_vm4, %v2080_v24, %v2083_v51  ;;  %v2095_v60 = vsel %vm2093_vm5, %v2094_v25, %v2092_v61  ;;  %v1340_v51 = vmin.f32 %v1338_v10, %v1339_v44  ;;  %v2565_v25 = vpop.f32.mrf.mxu1  ;;  %v4096_v10 = vmul.f32 2.0, %v3986_v21 }
 0x2d3   : > { %v2088_v8 = vsel %vm2086_vm6, %v2087_v59, %v2085_v12  ;;  %v2104_v31 = vsel %vm2102_vm3, 1000000.0, %v2095_v60  ;;  %v4114_v21 = vmul.f32 2.0, %v4018_v41  ;;  %v4135_v41 = vmul.f32 2.0, %v4053_v62 }
 0x2d4   : > { %v2103_v42 = vsel %vm2101_vm1, 1000000.0, %v2088_v8  ;;  %vm2106_vm7 = vcmp.lt.f32.partialorder %v2104_v31, 1e-06  ;;  %v1341_v63 = vrot.slane %v1340_v51, 1  ;;  %v1590_v59 = vpop.f32.mrf.mxu1  ;;  %v1790_v62 = vmul.f32 2.0, %v4071_v15 }
 0x2d5   : > { %vm2105_vm8 = vcmp.lt.f32.partialorder %v2103_v42, 1e-06  ;;  %v2108_v2 = vsel %vm2106_vm7, 1000000.0, %v2104_v31  ;;  %v4085_v13 = vpop.permute.xlu0 %1703  ;;  %4599 = vst [vmem:[#allocation6_spill] sm:$0xff] %v4114_v21  ;;  %4606 = vst [vmem:[#allocation18_spill] sm:$0xff] %v4135_v41 }
 0x2d6   : > { %v2107_v43 = vsel %vm2105_vm8, 1000000.0, %v2103_v42  ;;  %v2110_v14 = vsub.f32 0.02, %v2108_v2  ;;  %v1342_v12 = vmin.f32 %v1340_v51, %v1341_v63  ;;  %v2568_v60 = vpop.f32.mrf.mxu1  ;;  %v4099_v42 = vmul.f32 2.0, %v3989_v55  ;;  %v4616_v41 = vld [vmem:[#allocation72_spill] sm:$0xff] }
 0x2d7   : > { %v2109_v54 = vsub.f32 0.02, %v2107_v43  ;;  %v4102_v2 = vmul.f32 2.0, %v3996_v28  ;;  %v4117_v55 = vmul.f32 2.0, %v4021_v46  ;;  %v4120_v28 = vmul.f32 2.0, %v4028_v56 }
 0x2d8   : > { %v2112_v22 = vmax.f32 %v2110_v14, 0.0  ;;  %v1600_v31 = vpop.f32.mrf.mxu1  ;;  %v4105_v14 = vmul.f32 2.0, %v4001_v11  ;;  %v4126_v11 = vmul.f32 2.0, %v4038_v37  ;;  %v4138_v46 = vmul.f32 2.0, %v4055_v23 }
 0x2d9   : > { %v2111_v24 = vmax.f32 %v2109_v54, 0.0  ;;  %v4087_v8 = vpop.permute.xlu0 %1713  ;;  %v4090_v54 = vmul.f32 2.0, %v3974_v34  ;;  %v4108_v34 = vmul.f32 2.0, %v4006_v29  ;;  %4600 = vst [vmem:[#allocation9_spill] sm:$0xff] %v4117_v55  ;;  %4601 = vst [vmem:[#allocation8_spill] sm:$0xff] %v4120_v28  ;;  %v4129_v29 = vmul.f32 2.0, %v4043_v27 }
 0x2da   : > { %v2117_v61 = vsel %vm2113_vm9, %v2112_v22, 0.0  ;;  %v2571_v44 = vpop.f32.mrf.mxu1  ;;  %4603 = vst [vmem:[#allocation10_spill] sm:$0xff] %v4126_v11  ;;  %v1783_v56 = vmul.f32 2.0, %v4057_v16  ;;  %v1785_v37 = vmul.f32 2.0, %v4065_v50  ;;  %v4146_v51 = vmul.f32 2.0, %v4067_v35  ;;  %v4618_v11 = vld [vmem:[#allocation49_spill] sm:$0xff] }
 0x2db   : > { %1299 = vmin.xlane.f32.xlu0 %v3955_v9  ;;  %v2114_v32 = vsel %vm2113_vm9, %v2111_v24, 0.0  ;;  %v4093_v9 = vmul.f32 2.0, %v3979_v49  ;;  %v4111_v49 = vmul.f32 2.0, %v4011_v18  ;;  %v4123_v24 = vmul.f32 2.0, %v4033_v20  ;;  %4604 = vst [vmem:[#allocation15_spill] sm:$0xff] %v4129_v29  ;;  %v4620_v29 = vld [vmem:[#allocation48_spill] sm:$0xff] }
 0x2dc   : > { %2115 = vadd.xlane.f32.xlu1 %v2114_v32  ;;  %v4132_v18 = vmul.f32 2.0, %v4050_v38  ;;  %v4142_v20 = vmul.f32 2.0, %v4060_v0  ;;  %v1610_v32 = vpop.f32.mrf.mxu1  ;;  %v1787_v38 = vmul.f32 2.0, %v4069_v1  ;;  %v1789_v22 = vmul.f32 2.0, %v4075_v7  ;;  %v4607_v7 = vld [vmem:[#allocation57_spill] sm:$0xff]  ;;  %v4622_v28 = vld [vmem:[#allocation47_spill] sm:$0xff] }
 0x2dd   : > { %v1724_v43 = vpop.permute.xlu0 %1723  ;;  %4602 = vst [vmem:[#allocation11_spill] sm:$0xff] %v4123_v24  ;;  %v4154_v16 = vmul.f32 2.0, %v2562_v48  ;;  %v4156_v0 = vmul.f32 2.0, %v1580_v30  ;;  %v4158_v63 = vmul.f32 2.0, %v2565_v25  ;;  %v4160_v50 = vmul.f32 2.0, %v1590_v59  ;;  %v4608_v48 = vld [vmem:[#allocation41_spill] sm:$0xff] }
 0x2de   : > { %4605 = vst [vmem:[#allocation14_spill] sm:$0xff] %v4132_v18  ;;  %v4162_v35 = vmul.f32 2.0, %v2568_v60  ;;  %v4166_v1 = vmul.f32 2.0, %v2571_v44  ;;  %v4168_v15 = vmul.f32 2.0, %v1610_v32  ;;  %v4609_v25 = vld [vmem:[#allocation66_spill] sm:$0xff]  ;;  %v4614_v18 = vld [vmem:[#allocation45_spill] sm:$0xff] }
 0x2df   : > { %vm2127_vm1 = vcmask 7168   ;;  %vm2132_vm3 = vcmask 24576  }
 0x2e0   : > { %2118 = vadd.xlane.f32.xlu1 %v2117_v61  ;;  %v4164_v61 = vmul.f32 2.0, %v1600_v31  ;;  %v4611_v31 = vld [vmem:[#allocation43_spill] sm:$0xff] }
 0x2e4   : > { %1343 = vadd.xlane.f32.xlu1 %v1342_v12  ;;  %v4610_v12 = vld [vmem:[#allocation44_spill] sm:$0xff] }
 0x2ee   : > { %v1635_v27 = vpop.trf.xlu0 }
 0x2ef   : > { %v4152_v23 = vrot.slane %v1635_v27, %v4595_v26  ;;  %v4612_v27 = vld [vmem:[#allocation51_spill] sm:$0xff] }
 0x2f1   : > { %v4172_v26 = vadd.f32 %v4152_v23, %v4607_v7  ;;  %v4176_v30 = vadd.f32 %v4152_v23, %v4608_v48  ;;  %v4180_v59 = vadd.f32 %v4152_v23, %v4609_v25  ;;  %v4184_v60 = vadd.f32 %v4152_v23, %v4610_v12  ;;  %v4613_v7 = vld [vmem:[#allocation46_spill] sm:$0xff] }
 0x2f2   : > { %v4188_v44 = vadd.f32 %v4152_v23, %v4611_v31  ;;  %v4192_v32 = vadd.f32 %v4152_v23, %v4612_v27  ;;  %v4196_v48 = vadd.f32 %v4152_v23, %v4613_v7  ;;  %v4200_v25 = vadd.f32 %v4152_v23, %v4614_v18 }
 0x2f3   : > { %v4204_v12 = vadd.f32 %v4152_v23, %v4616_v41  ;;  %v4208_v31 = vadd.f32 %v4152_v23, %v4618_v11  ;;  %v4212_v27 = vadd.f32 %v4152_v23, %v4620_v29  ;;  %v4216_v7 = vadd.f32 %v4152_v23, %v4622_v28 }
 0x2f4   : > { %4615 = vst [vmem:[#allocation17_spill] sm:$0xff] %v4200_v25  ;;  %v1751_v18 = vadd.f32 %v4152_v23, %v3967_v39  ;;  %v1752_v24 = vadd.f32 %v4152_v23, %v4082_v40  ;;  %v1753_v41 = vadd.f32 %v4152_v23, %v3969_v19  ;;  %v1754_v11 = vadd.f32 %v4152_v23, %v3977_v33 }
 0x2f5   : > { %4617 = vst [vmem:[#allocation21_spill] sm:$0xff] %v4204_v12  ;;  %4619 = vst [vmem:[#allocation20_spill] sm:$0xff] %v4208_v31  ;;  %v1755_v29 = vadd.f32 %v4152_v23, %v3983_v52  ;;  %v1757_v28 = vadd.f32 %v4152_v23, %v3999_v58  ;;  %v1758_v39 = vadd.f32 %v4152_v23, %v4009_v5 }
 0x2f6   : > { %4621 = vst [vmem:[#allocation26_spill] sm:$0xff] %v4212_v27  ;;  %4623 = vst [vmem:[#allocation25_spill] sm:$0xff] %v4216_v7  ;;  %v1756_v27 = vadd.f32 %v4152_v23, %v3991_v4  ;;  %v1759_v40 = vadd.f32 %v4152_v23, %v4015_v36  ;;  %v1760_v19 = vadd.f32 %v4152_v23, %v4023_v47 }
 0x2f7   : > { %v1761_v33 = vadd.f32 %v4152_v23, %v4085_v13  ;;  %v1762_v52 = vadd.f32 %v4152_v23, %v4031_v17  ;;  %v1763_v4 = vadd.f32 %v4152_v23, %v4087_v8  ;;  %v1764_v58 = vadd.f32 %v4152_v23, %v4041_v53 }
 0x2f8   : > { %v1765_v5 = vadd.f32 %v4152_v23, %v1724_v43  ;;  %v1766_v36 = vadd.f32 %v4152_v23, %v4047_v3  ;;  %v1815_v7 = vsub.f32 %v1751_v18, %v1783_v56  ;;  %v1816_v47 = vsub.f32 %v1752_v24, %v4138_v46 }
 0x2f9   : > { %v1817_v31 = vsub.f32 %v1753_v41, %v1785_v37  ;;  %v1818_v13 = vsub.f32 %v1754_v11, %v4142_v20  ;;  %v1819_v21 = vsub.f32 %v1755_v29, %v1787_v38  ;;  %v1820_v17 = vsub.f32 %v1756_v27, %v4146_v51  ;;  %v4624_v27 = vld [vmem:[#allocation7_spill] sm:$0xff] }
 0x2fa   : > { %v1821_v12 = vsub.f32 %v1757_v28, %v1789_v22  ;;  %v1822_v55 = vsub.f32 %v1758_v39, %v1790_v62  ;;  %v1823_v8 = vsub.f32 %v1759_v40, %v4156_v0  ;;  %v1824_v53 = vsub.f32 %v1760_v19, %v4154_v16 }
 0x2fb   : > { %v1825_v43 = vsub.f32 %v1761_v33, %v4160_v50  ;;  %v1826_v25 = vsub.f32 %v1762_v52, %v4158_v63  ;;  %v1827_v3 = vsub.f32 %v1763_v4, %v4164_v61  ;;  %v1828_v24 = vsub.f32 %v1764_v58, %v4162_v35 }
 0x2fc   : > { %v1829_v46 = vsub.f32 %v1765_v5, %v4168_v15  ;;  %v1830_v56 = vsub.f32 %v1766_v36, %v4166_v1  ;;  %v1847_v20 = vmax.f32 %v1815_v7, 0.0  ;;  %v1848_v37 = vmax.f32 %v1816_v47, 0.0  ;;  %v4628_v47 = vld [vmem:[#allocation6_spill] sm:$0xff] }
 0x2fd   : > { %v1849_v51 = vmax.f32 %v1817_v31, 0.0  ;;  %v1850_v38 = vmax.f32 %v1818_v13, 0.0  ;;  %v1851_v62 = vmax.f32 %v1819_v21, 0.0  ;;  %v1852_v22 = vmax.f32 %v1820_v17, 0.0  ;;  %v4629_v13 = vld [vmem:[#allocation20_spill] sm:$0xff] }
 0x2fe   : > { %v1853_v0 = vmax.f32 %v1821_v12, 0.0  ;;  %v1854_v16 = vmax.f32 %v1822_v55, 0.0  ;;  %v1747_v50 = vadd.f32 %v4152_v23, %v4624_v27  ;;  %v1748_v63 = vadd.f32 %v4152_v23, %v3937_v45  ;;  %v4637_v27 = vld [vmem:[#allocation14_spill] sm:$0xff] }
 0x2ff   : > { %v4266_v35 = vadd.f32 %v4152_v23, %v3942_v57  ;;  %v4270_v61 = vadd.f32 %v4152_v23, %v3947_v6  ;;  %v1855_v1 = vmax.f32 %v1823_v8, 0.0  ;;  %v1856_v15 = vmax.f32 %v1824_v53, 0.0  ;;  %v4630_v8 = vld [vmem:[#allocation11_spill] sm:$0xff]  ;;  %v4631_v53 = vld [vmem:[#allocation26_spill] sm:$0xff] }
 0x300   : > { %v1857_v21 = vmax.f32 %v1825_v43, 0.0  ;;  %v1858_v31 = vmax.f32 %v1826_v25, 0.0  ;;  %v1891_v12 = vmin.f32 %v1847_v20, %v1851_v62  ;;  %v1892_v55 = vmin.f32 %v1848_v37, %v1852_v22  ;;  %v4633_v43 = vld [vmem:[#allocation25_spill] sm:$0xff]  ;;  %v4635_v62 = vld [vmem:[#allocation10_spill] sm:$0xff] }
 0x301   : > { %v1893_v7 = vmin.f32 %v1849_v51, %v1853_v0  ;;  %v1894_v18 = vmin.f32 %v1850_v38, %v1854_v16  ;;  %v1859_v41 = vmax.f32 %v1827_v3, 0.0  ;;  %v1860_v11 = vmax.f32 %v1828_v24, 0.0  ;;  %v4636_v0 = vld [vmem:[#allocation18_spill] sm:$0xff] }
 0x302   : > { %v1861_v29 = vmax.f32 %v1829_v46, 0.0  ;;  %v1862_v45 = vmax.f32 %v1830_v56, 0.0  ;;  %v1895_v28 = vmin.f32 %v1891_v12, %v1855_v1  ;;  %v1896_v39 = vmin.f32 %v1892_v55, %v1856_v15 }
 0x303   : > { %v1897_v57 = vmin.f32 %v1893_v7, %v1857_v21  ;;  %v1898_v40 = vmin.f32 %v1894_v18, %v1858_v31  ;;  %v1799_v6 = vsub.f32 %v4172_v26, %v4093_v9  ;;  %v1800_v23 = vsub.f32 %v4176_v30, %v4090_v54  ;;  %v4625_v54 = vld [vmem:[#allocation17_spill] sm:$0xff] }
 0x304   : > { %v1801_v25 = vsub.f32 %v4180_v59, %v4099_v42  ;;  %v1802_v19 = vsub.f32 %v4184_v60, %v4096_v10  ;;  %v1899_v33 = vmin.f32 %v1895_v28, %v1859_v41  ;;  %v1900_v52 = vmin.f32 %v1896_v39, %v1860_v11  ;;  %v4626_v59 = vld [vmem:[#allocation9_spill] sm:$0xff] }
 0x305   : > { %v1901_v4 = vmin.f32 %v1897_v57, %v1861_v29  ;;  %v1902_v58 = vmin.f32 %v1898_v40, %v1862_v45  ;;  %v1803_v5 = vsub.f32 %v4188_v44, %v4105_v14  ;;  %v1804_v36 = vsub.f32 %v4192_v32, %v4102_v2  ;;  %v4627_v10 = vld [vmem:[#allocation21_spill] sm:$0xff]  ;;  %v4632_v44 = vld [vmem:[#allocation8_spill] sm:$0xff]  ;;  %v4634_v32 = vld [vmem:[#allocation15_spill] sm:$0xff] }
 0x306   : > { %v1805_v9 = vsub.f32 %v4196_v48, %v4111_v49  ;;  %v1806_v26 = vsub.f32 %v4625_v54, %v4108_v34  ;;  %v1903_v42 = vmin.f32 %v1899_v33, %v1900_v52  ;;  %v1807_v60 = vsub.f32 %v4627_v10, %v4626_v59 }
 0x307   : > { %v1904_v30 = vmin.f32 %v1901_v4, %v1902_v58  ;;  %v1808_v17 = vsub.f32 %v4629_v13, %v4628_v47  ;;  %v1809_v14 = vsub.f32 %v4631_v53, %v4630_v8  ;;  %v1810_v2 = vsub.f32 %v4633_v43, %v4632_v44 }
 0x308   : > { %v1811_v3 = vsub.f32 %v1747_v50, %v4634_v32  ;;  %v1831_v49 = vmax.f32 %v1799_v6, 0.0  ;;  %v1832_v24 = vmax.f32 %v1800_v23, 0.0  ;;  %v1833_v34 = vmax.f32 %v1801_v25, 0.0 }
 0x309   : > { %v1905_v48 = vmin.f32 %v1903_v42, %v1904_v30  ;;  %v1834_v46 = vmax.f32 %v1802_v19, 0.0  ;;  %v1835_v56 = vmax.f32 %v1803_v5, 0.0  ;;  %v1836_v20 = vmax.f32 %v1804_v36, 0.0 }
 0x30a   : > { %v1837_v37 = vmax.f32 %v1805_v9, 0.0  ;;  %v1838_v51 = vmax.f32 %v1806_v26, 0.0  ;;  %v1812_v22 = vsub.f32 %v1748_v63, %v4635_v62  ;;  %v1813_v16 = vsub.f32 %v4266_v35, %v4636_v0 }
 0x30b   : > { %v1906_v38 = vrot.slane %v1905_v48, 4  ;;  %v1814_v1 = vsub.f32 %v4270_v61, %v4637_v27  ;;  %v1839_v15 = vmax.f32 %v1807_v60, 0.0  ;;  %v1840_v50 = vmax.f32 %v1808_v17, 0.0 }
 0x30c   : > { %v1841_v31 = vmax.f32 %v1809_v14, 0.0  ;;  %v1863_v12 = vmin.f32 %v1831_v49, %v1835_v56  ;;  %v1864_v55 = vmin.f32 %v1832_v24, %v1836_v20  ;;  %v1842_v7 = vmax.f32 %v1810_v2, 0.0 }
 0x30d   : > { %v1907_v21 = vmin.f32 %v1905_v48, %v1906_v38  ;;  %v1843_v18 = vmax.f32 %v1811_v3, 0.0  ;;  %v1865_v41 = vmin.f32 %v1833_v34, %v1837_v37  ;;  %v1866_v11 = vmin.f32 %v1834_v46, %v1838_v51 }
 0x30e   : > { %v1844_v45 = vmax.f32 %v1812_v22, 0.0  ;;  %v1867_v28 = vmin.f32 %v1863_v12, %v1839_v15  ;;  %v1868_v63 = vmin.f32 %v1864_v55, %v1840_v50  ;;  %v1845_v39 = vmax.f32 %v1813_v16, 0.0  ;;  %v344_v22 = vld [vmem:[%s290_s9] sm:$0x1]  ;;  %v1298_v50 = vpop.xlane.xlu1 %1297  ;;  %v4638_v12 = vld [vmem:[#allocation5_spill] sm:$0xff] }
 0x30f   : > { %v1908_v29 = vrot.slane %v1907_v21, 2  ;;  %v1846_v57 = vmax.f32 %v1814_v1, 0.0  ;;  %v1869_v35 = vmin.f32 %v1865_v41, %v1841_v31  ;;  %v1870_v40 = vmin.f32 %v1866_v11, %v1842_v7 }
 0x310   : > { %v1871_v61 = vmin.f32 %v1867_v28, %v1843_v18  ;;  %v1872_v23 = vmin.f32 %v1868_v63, %v1844_v45  ;;  %vm1941_vm14 = vcmp.gt.f32.partialorder %v344_v22, 0.0  ;;  %v1314_v55 = vadd.f32 %v4638_v12, %v1298_v50 }
 0x311   : > { %v1909_v6 = vmin.f32 %v1907_v21, %v1908_v29  ;;  %v1873_v25 = vmin.f32 %v1869_v35, %v1845_v39  ;;  %v1874_v19 = vmin.f32 %v1870_v40, %v1846_v57  ;;  %v1942_v1 = vsel %vm1941_vm14, %v344_v22, 0.0 }
 0x312   : > { %v1875_v52 = vmin.f32 %v1871_v61, %v1872_v23  ;;  %v1944_v15 = vsel %vm1943_vm15, %v1942_v1, 0.0 }
 0x313   : > { %v1910_v33 = vrot.slane %v1909_v6, 1  ;;  %v1876_v4 = vmin.f32 %v1873_v25, %v1874_v19 }
 0x315   : > { %v1911_v58 = vmin.f32 %v1909_v6, %v1910_v33  ;;  %v1877_v5 = vmin.f32 %v1875_v52, %v1876_v4 }
 0x317   : > { %2628 = vrsqrt.f32 %v1911_v58  ;;  %v1878_v36 = vrot.slane %v1877_v5, 4  ;;  %vm1914_vm10 = vcmp.eq.f32.partialorder %v1911_v58, inf  ;;  %v1917_v60 = vand.u32 2147483648, %v1911_v58 }
 0x318   : > { %vm1916_vm11 = vcmp.eq.f32.partialorder %v1911_v58, 0.0 }
 0x319   : > { %v1879_v9 = vmin.f32 %v1877_v5, %v1878_v36 }
 0x31b   : > { %v1880_v54 = vrot.slane %v1879_v9, 2 }
 0x31d   : > { %v1881_v26 = vmin.f32 %v1879_v9, %v1880_v54 }
 0x31f   : > { %v1882_v42 = vrot.slane %v1881_v26, 1 }
 0x321   : > { %v1883_v30 = vmin.f32 %v1881_v26, %v1882_v42 }
 0x323   : > { %2630 = vrsqrt.f32 %v1883_v30  ;;  %vm1886_vm12 = vcmp.eq.f32.partialorder %v1883_v30, inf  ;;  %v1889_v44 = vand.u32 2147483648, %v1883_v30  ;;  %vm1888_vm13 = vcmp.eq.f32.partialorder %v1883_v30, 0.0 }
 0x324   : > { %v2629_v59 = vpop.eup %2628 }
 0x325   : > { %v1913_v10 = vmul.f32 %v2629_v59, %v1911_v58 }
 0x327   : > { %v1915_v47 = vsel %vm1914_vm10, %v1911_v58, %v1913_v10 }
 0x328   : > { %v1918_v13 = vsel %vm1916_vm11, %v1917_v60, %v1915_v47 }
 0x329   : > { %v1928_v17 = vmul.f32 -100.0, %v1918_v13 }
 0x32b   : > { %v1929_v8 = vmul.f32 1.442695, %v1928_v17 }
 0x32d   : > { %2632 = vpow2.f32 %v1929_v8 }
 0x330   : > { %v2631_v53 = vpop.eup %2630 }
 0x331   : > { %v1885_v14 = vmul.f32 %v2631_v53, %v1883_v30 }
 0x333   : > { %v1887_v43 = vsel %vm1886_vm12, %v1883_v30, %v1885_v14 }
 0x334   : > { %v1890_v2 = vsel %vm1888_vm13, %v1889_v44, %v1887_v43 }
 0x335   : > { %v1919_v32 = vmul.f32 -100.0, %v1890_v2 }
 0x337   : > { %v1920_v3 = vmul.f32 1.442695, %v1919_v32 }
 0x339   : > { %2634 = vpow2.f32 %v1920_v3 }
 0x33a   : > { %v2633_v49 = vpop.eup %2632 }
 0x33b   : > { %v1931_v48 = vadd.f32 1.0, %v2633_v49 }
 0x33d   : > { %2636 = vrcp.f32 %v1931_v48 }
 0x346   : > { %v2635_v24 = vpop.eup %2634 }
 0x347   : > { %v1922_v34 = vadd.f32 1.0, %v2635_v24 }
 0x349   : > { %2638 = vrcp.f32 %v1922_v34 }
 0x34a   : > { %v2637_v46 = vpop.eup %2636 }
 0x34b   : > { %v2340_v56 = vadd.f32 -0.5, %v2637_v46 }
 0x34d   : > { %v1935_v20 = vmul.f32 2.0, %v2340_v56 }
 0x34f   : > { %v1936_v62 = vsub.f32 1.0, %v1935_v20 }
 0x356   : > { %v2639_v37 = vpop.eup %2638 }
 0x357   : > { %v2339_v51 = vadd.f32 -0.5, %v2639_v37 }
 0x359   : > { %v1926_v38 = vmul.f32 2.0, %v2339_v51 }
 0x35b   : > { %v1927_v0 = vsub.f32 1.0, %v1926_v38 }
 0x35d   : > { %v1937_v16 = vsub.f32 %v1927_v0, %v1936_v62 }
 0x35f   : > { %v1938_v27 = vmul.f32 %v1937_v16, %v1937_v16 }
 0x361   : > { %1939 = vadd.xlane.f32.xlu1 %v1938_v27 }
 0x364   : > { %v1300_v31 = vpop.xlane.xlu0 %1299 }
 0x365   : > { %1945 = vadd.xlane.f32.xlu1 %v1944_v15  ;;  %v2116_v21 = vpop.xlane.xlu1 %2115  ;;  %v1315_v7 = vadd.f32 %v1314_v55, %v1300_v31 }
 0x367   : > { %v1316_v41 = vrot.slane %v1315_v7, 4 }
 0x369   : > { %v2119_v18 = vpop.xlane.xlu1 %2118  ;;  %v1317_v29 = vadd.f32 %v1316_v41, %v1315_v7 }
 0x36a   : > { %v2120_v11 = vadd.f32 %v2119_v18, %v2116_v21 }
 0x36b   : > { %v1318_v28 = vrot.slane %v1317_v29, 2 }
 0x36c   : > { %v2121_v45 = vrot.slane %v2120_v11, 4 }
 0x36d   : > { %v1319_v39 = vadd.f32 %v1318_v28, %v1317_v29  ;;  %v1344_v6 = vpop.xlane.xlu1 %1343 }
 0x36e   : > { %v2122_v63 = vadd.f32 %v2121_v45, %v2120_v11 }
 0x36f   : > { %v1320_v35 = vrot.slane %v1319_v39, 1 }
 0x370   : > { %v2123_v57 = vrot.slane %v2122_v63, 2 }
 0x371   : > { %v1321_v61 = vadd.f32 %v1320_v35, %v1319_v39 }
 0x372   : > { %v2124_v40 = vadd.f32 %v2123_v57, %v2122_v63 }
 0x373   : > { %v1345_v19 = vadd.f32 %v1344_v6, %v1321_v61 }
 0x374   : > { %v2125_v23 = vrot.slane %v2124_v40, 1 }
 0x376   : > { %v2126_v33 = vadd.f32 %v2125_v23, %v2124_v40 }
 0x3ea   : > { %v1940_v25 = vpop.xlane.xlu1 %1939 }
 0x3eb   : > { %v2128_v52 = vsel %vm2127_vm1, %v1345_v19, %v1940_v25 }
 0x3ee   : > { %v1946_v4 = vpop.xlane.xlu1 %1945 }
 0x3ef   : > { %v2130_v58 = vsel %vm2129_vm2, %v2128_v52, %v1946_v4 }
 0x3f0   : > { %v2131_v5 = vsel %vm847_vm0, %v2130_v58, %v2126_v33 }
 0x3f1   : > { %2133 = vst.msk [vmem:[%s272_s11] sm:$0x1] %vm2132_vm3, %v2131_v5 }
 0x3f2   : > { %2653 = shalt.err (!%p2650_p3)
}
 0x3f3   : > { %s2654_s26 = scalar_lea.hbm %s4312_s15, 16  ;;  %s2658_s8 = scalar_lea.hbm %s4353_s5, 32 }
 0x3f4   : > { %p2655_p4 = scmp.ne.s32.totalorder %s4312_s15, %s2654_s26  ;;  %p2659_p9 = scmp.lt.s32.totalorder %s4312_s15, %s4353_s5 }
 0x3f5   : > { %p2660_p10 = scmp.lt.s32.totalorder %s2658_s8, %s2654_s26 }
 0x3f6   : > { %p2656_p7 = pnand %p2655_p4, %p2774_p5 }
 0x3f7   : > { %p2661_p11 = por %p2660_p10, %p2659_p9 }
 0x3f8   : > { %p2657_p8 = pneg %p2656_p7 }
 0x3fa   : > { %p2662_p12 = pnand %p2661_p11, %p2657_p8 }
 0x3fc   : > { %2665 = shalt.err (!%p2662_p12)
}
 0x3fd   : > { %2579 = dma.vmem_to_hbm [thread:$0]  (%p2774_p5), %s2148_s12, 16, %s4312_s15, %s2135_s16  }
 0x3fe PF: > { %p2585_p13 = scmp.ge.s32.totalorder %s2700_s21, 2  ;;  %s2159_s10 = sand.u32 1, %s2688_s18  }
 0x3ff   : > { %s2160_s11 = scalar_lea.sflag [#allocation3], %s2159_s10 }
 0x400   : > { %p2582_p0 = pnand %p2585_p13, %p2778_p6 }
 0x402   : > { %p2583_p1 = pneg %p2582_p0 }
 0x404   : > { %2683 = dma.done.wait (%p2583_p1), %s2160_s11, 16  }
 0x405   : > { %2685 = vsyncadd (%p2583_p1), %s2160_s11, 4294967280  ;;  %p15_p2 = scmp.ge.s32.totalorder %s2761_s24, 4   ;;  %s4639_s18 = smov %s2692_s19 }
 0x406   : > { %s4640_s19 = smov %s2696_s20  ;;  %s4641_s20 = smov %s2772_s27 }
 0x407   : > { %s4642_s21 = smov %s2761_s24  ;;  %17 = sbr.rel (!%p15_p2) target bundleno = 3 (0x3), region = 87 }
 0x40c   :  { %2164 = vsyncpa [#allocation3], 1 }
 0x40d   :  { %2166 = vsyncpa [#allocation3 + $0x1], 1 }

</bundles_post_ra>
